<compile_context>
chip_gen: v7x
topology: tpu7x:2x2x1
jax: 0.10.0
libtpu: 0.0.40
codegen_flags: <defaults>
</compile_context>

<pallas_src>
import jax
import jax.numpy as jnp
from jax import lax
from jax.experimental import pallas as pl
from jax.experimental.pallas import tpu as pltpu

S_PROTO_NUM = 8                      # K
S_DIM = 72 * 7                       # 504  (18 frames * 4 ch, 7x7 pooled -> 7)
ST_DIM = 16 * 7                      # 112  ( 4 frames * 4 ch, 7x7 pooled -> 7)
PROTO_DIM = 998                      # D = T + S + ST
T_DIM = PROTO_DIM - S_DIM - ST_DIM   # 382
# lane-dense padded segment widths
T_PAD = 384
S_PAD = 512
ST_PAD = 128


# ---------------------------------------------------------------------------
# Fused kernel
# ---------------------------------------------------------------------------
def _protonet_kernel(a_s_ref, b_s_ref, w_s_ref,
                     a_st_ref, b_st_ref, w_st_ref,
                     t_ref, p_t_ref, p_s_ref, p_st_ref, p2_ref, fc_ref,
                     soft_ref, shad_ref, s_ref, st_ref):
    def gated_pool(a_ref, b_ref, w_ref, out_ref):
        # a/b/w: (7, TN, F) slabs indexed [w, n, c*7+h]; w is pre-sigmoided
        # and pre-broadcast, so the merge is pure elementwise VPU work.
        a = a_ref[...]
        b = b_ref[...]
        m = b + w_ref[...] * (a - b)          # w*a + (1-w)*b, one vmul
        # TODO(synk): avg_directional_pooling is not defined in the reference
        # model file; implemented here as the mean along the width axis.
        s = ((m[0] + m[1]) + (m[2] + m[3])) + ((m[4] + m[5]) + m[6])
        pooled = s * (1.0 / 7.0)              # (TN, F), lane-dense
        out_ref[...] = pooled                 # unmasked full store
        return pooled

    s_pooled = gated_pool(a_s_ref, b_s_ref, w_s_ref, s_ref)        # (TN, 512)
    st_pooled = gated_pool(a_st_ref, b_st_ref, w_st_ref, st_ref)   # (TN, 128)
    t = t_ref[...]                                                  # (TN, 384)

    # ||x||^2 segment-wise (pad columns are zero, so they contribute nothing)
    x2 = (jnp.sum(t * t, axis=1, keepdims=True)
          + jnp.sum(s_pooled * s_pooled, axis=1, keepdims=True)
          + jnp.sum(st_pooled * st_pooled, axis=1, keepdims=True))  # (TN, 1)

    # x . p as three small MXU passes against the zero-padded segments
    dn = (((1,), (1,)), ((), ()))                                   # contract last dims
    xp = (lax.dot_general(t, p_t_ref[...], dn,
                          preferred_element_type=jnp.float32)
          + lax.dot_general(s_pooled, p_s_ref[...], dn,
                            preferred_element_type=jnp.float32)
          + lax.dot_general(st_pooled, p_st_ref[...], dn,
                            preferred_element_type=jnp.float32))    # (TN, K)

    # spatial_proto = 1 / cdist(x, prototypes)   (exact divide)
    d = jnp.sqrt(jnp.maximum(x2 + p2_ref[...] - 2.0 * xp, 0.0))
    proto = 1.0 / d

    # min/max row normalisation (exact divide, matches the reference)
    shad = proto - jnp.min(proto, axis=1, keepdims=True)
    shad = shad / jnp.max(shad, axis=1, keepdims=True)
    shad_ref[...] = shad

    # FC(K -> 2, no bias) on the VPU + exact softmax(dim=1)
    fc = fc_ref[...]                                                # (2, K)
    l0 = jnp.sum(shad * fc[0:1, :], axis=1, keepdims=True)          # (TN, 1)
    l1 = jnp.sum(shad * fc[1:2, :], axis=1, keepdims=True)
    mx = jnp.maximum(l0, l1)
    e0 = jnp.exp(l0 - mx)
    e1 = jnp.exp(l1 - mx)
    inv = 1.0 / (e0 + e1)                                           # exact
    soft_ref[:, 0:1] = e0 * inv
    soft_ref[:, 1:2] = e1 * inv


def _fused_protonet(a_s, b_s, w_s, a_st, b_st, w_st, temporal,
                    p_t, p_s, p_st, p2, fc_w):
    N = temporal.shape[0]
    K = p2.shape[1]
    TN = N if N <= 128 else 128           # row tile (full dim or multiple of 8)
    grid = (pl.cdiv(N, TN),)

    n_in = (3 * 7 * N * (S_PAD + ST_PAD) + N * T_PAD
            + K * (T_PAD + S_PAD + ST_PAD) + 3 * K)
    n_out = N * (2 + K + S_PAD + ST_PAD)
    cost = pl.CostEstimate(
        flops=(4 * 7 * N * (S_PAD + ST_PAD)                 # merge + pool
               + 2 * N * (K + 1) * (T_PAD + S_PAD + ST_PAD)  # xp + x2
               + 8 * N * K),                                 # dist / norm / fc
        transcendentals=2 * N,                               # softmax exps
        bytes_accessed=4 * (n_in + n_out))

    out_shapes = (
        jax.ShapeDtypeStruct((N, 2), jnp.float32),           # softmax output
        jax.ShapeDtypeStruct((N, K), jnp.float32),           # spatial_proto
        jax.ShapeDtypeStruct((N, S_PAD), jnp.float32),       # S_encd (padded)
        jax.ShapeDtypeStruct((N, ST_PAD), jnp.float32),      # ST_encd (padded)
    )
    return pl.pallas_call(
        _protonet_kernel,
        out_shape=out_shapes,
        grid=grid,
        in_specs=[
            pl.BlockSpec((7, TN, S_PAD), lambda i: (0, i, 0)),   # a_s  (view_5)
            pl.BlockSpec((7, TN, S_PAD), lambda i: (0, i, 0)),   # b_s  (view_3)
            pl.BlockSpec((7, TN, S_PAD), lambda i: (0, i, 0)),   # w_s
            pl.BlockSpec((7, TN, ST_PAD), lambda i: (0, i, 0)),  # a_st (view_3)
            pl.BlockSpec((7, TN, ST_PAD), lambda i: (0, i, 0)),  # b_st (view_5)
            pl.BlockSpec((7, TN, ST_PAD), lambda i: (0, i, 0)),  # w_st
            pl.BlockSpec((TN, T_PAD), lambda i: (i, 0)),         # temporal
            pl.BlockSpec((K, T_PAD), lambda i: (0, 0)),          # proto T seg
            pl.BlockSpec((K, S_PAD), lambda i: (0, 0)),          # proto S seg
            pl.BlockSpec((K, ST_PAD), lambda i: (0, 0)),         # proto ST seg
            pl.BlockSpec((1, K), lambda i: (0, 0)),              # ||p||^2
            pl.BlockSpec((2, K), lambda i: (0, 0)),              # FC weight
        ],
        out_specs=(
            pl.BlockSpec((TN, 2), lambda i: (i, 0)),
            pl.BlockSpec((TN, K), lambda i: (i, 0)),
            pl.BlockSpec((TN, S_PAD), lambda i: (i, 0)),
            pl.BlockSpec((TN, ST_PAD), lambda i: (i, 0)),
        ),
        compiler_params=pltpu.CompilerParams(
            dimension_semantics=("parallel",)),   # rows independent -> both TCs
        cost_estimate=cost,
    )(a_s, b_s, w_s, a_st, b_st, w_st, temporal, p_t, p_s, p_st, p2, fc_w)


# ---------------------------------------------------------------------------
# Plain-JAX glue (reshape / slice / pad / transpose + parameter-only math)
# ---------------------------------------------------------------------------
def _prep_slabs(view, nframes, pad_to):
    """Reference reshape/permute/pad plumbing re-laid-out as (7, N, pad_to)
    slabs indexed [w, n, c*7+h] (zero-padded lane-dense) so the in-kernel
    merge + width-pool is pure elementwise work with full-vreg stores."""
    b, loc, _ = view.shape
    N = b * loc
    C = nframes * 4
    v = view.reshape(b, loc, nframes, 74, 4)
    v3 = v[:, :, :, :49, :].reshape(N, nframes, 7, 7, 4)
    v5 = v[:, :, :, 49:, :].reshape(N, nframes, 5, 5, 4)
    v3 = v3.transpose(0, 1, 4, 2, 3).reshape(N, C, 7, 7)
    v5 = v5.transpose(0, 1, 4, 2, 3).reshape(N, C, 5, 5)
    v5 = jnp.pad(v5, ((0, 0), (0, 0), (1, 1), (1, 1)))   # nn.ZeroPad2d(1)

    def slab(x):                                          # (N,C,7,7)->(7,N,pad)
        s = x.transpose(3, 0, 1, 2).reshape(7, N, C * 7)
        return jnp.pad(s, ((0, 0), (0, 0), (0, pad_to - C * 7)))

    return slab(v3), slab(v5)


def _weight_slab(weights_wh, nframes, pad_to, N):
    """Pre-sigmoided loc weights laid out to match the slabs: [w, n, c*7+h]."""
    C = nframes * 4
    ws = jnp.tile(weights_wh, (1, C))                     # (7, C*7)
    ws = jnp.pad(ws, ((0, 0), (0, pad_to - C * 7)))
    return jnp.broadcast_to(ws[:, None, :], (7, N, pad_to))


def protonet_forward(params, spatial_tempoal_view, spatial_view, temporal_view):
    b, loc, _ = spatial_view.shape
    N = b * loc
    K = S_PROTO_NUM

    # ---- parameter-only math, hoisted out of the kernel --------------------
    w_wh = jax.nn.sigmoid(params["loc_weights"]).reshape(7, 7).T   # [w, h]
    w_s = _weight_slab(w_wh, 18, S_PAD, N)                # (7, N, 512)
    w_st = _weight_slab(w_wh, 4, ST_PAD, N)               # (7, N, 128)

    p = params["S_prototype_vectors"]                     # (K, 998)
    pad = lambda x, width: jnp.pad(x, ((0, 0), (0, width - x.shape[1])))
    p_t = pad(p[:, :T_DIM], T_PAD)
    p_s = pad(p[:, T_DIM:T_DIM + S_DIM], S_PAD)
    p_st = pad(p[:, T_DIM + S_DIM:], ST_PAD)
    p2 = jnp.sum(p * p, axis=1)[None, :]                  # (1, K)

    # diversity loss: -mean pairwise L2 distance between distinct prototypes
    diff = p[:, None, :] - p[None, :, :]
    pdist = jnp.sqrt(jnp.sum(diff * diff, axis=-1))       # (K, K), diag = 0
    loss_diver = (-jnp.sum(pdist) / float(K * (K - 1))).reshape(1, 1)

    # ---- input plumbing -----------------------------------------------------
    s3, s5 = _prep_slabs(spatial_view, 18, S_PAD)          # (7, N, 512) each
    st3, st5 = _prep_slabs(spatial_tempoal_view, 4, ST_PAD)  # (7, N, 128) each

    T = temporal_view.shape[1]                             # 382
    temporal = jnp.broadcast_to(
        temporal_view[:, None, :], (b, loc, T)).reshape(N, T)
    temporal_pad = pad(temporal, T_PAD)

    # merged2 = s5*w + (1-w)*s3   ;   merged = st3*w + (1-w)*st5
    soft, shad, s_enc, st_enc = _fused_protonet(
        s5, s3, w_s, st3, st5, w_st, temporal_pad,
        p_t, p_s, p_st, p2, params["fc_weight"])

    S_encd = s_enc[:, :S_DIM]
    ST_encd = st_enc[:, :ST_DIM]
    res = jnp.ones((860,), jnp.float32)
    # TODO(synk): the reference also computes an L0 loss from qz_loga but
    # never returns it, so it is omitted here.
    return soft, 0, shad, (ST_encd, temporal, S_encd, res), loss_diver


def init_params(key):
    k1, k2, k3, k4 = jax.random.split(key, 4)
    bound = (1.0 / S_PROTO_NUM) ** 0.5
    return {
        "S_prototype_vectors": jax.random.uniform(
            k1, (S_PROTO_NUM, PROTO_DIM), jnp.float32),          # torch.rand
        "loc_weights": jax.random.uniform(k2, (49,), jnp.float32),
        "qz_loga": jax.random.normal(k3, (S_PROTO_NUM,), jnp.float32),
        "fc_weight": jax.random.uniform(                         # nn.Linear(8,2)
            k4, (2, S_PROTO_NUM), jnp.float32, minval=-bound, maxval=bound),
    }


if __name__ == "__main__":
    key = jax.random.PRNGKey(0)
    pkey, k_st, k_s, k_t = jax.random.split(key, 4)
    params = init_params(pkey)

    b, loc = 2, 4
    spatial_tempoal_view = jax.random.uniform(
        k_st, (b, loc, 4 * 74 * 4), jnp.float32)                 # (2, 4, 1184)
    spatial_view = jax.random.uniform(
        k_s, (b, loc, 18 * 74 * 4), jnp.float32)                 # (2, 4, 5328)
    temporal_view = jax.random.uniform(k_t, (b, T_DIM), jnp.float32)  # (2, 382)

    fwd = jax.jit(protonet_forward)
    out, _, spatial_proto, (ST_e, T_e, S_e, res), loss_diver = fwd(
        params, spatial_tempoal_view, spatial_view, temporal_view)

    jax.block_until_ready((out, spatial_proto, ST_e, T_e, S_e, res, loss_diver))
    assert out.shape == (b * loc, 2)
    assert spatial_proto.shape == (b * loc, S_PROTO_NUM)
    assert S_e.shape == (b * loc, S_DIM)
    assert ST_e.shape == (b * loc, ST_DIM)
    assert T_e.shape == (b * loc, T_DIM)
    assert loss_diver.shape == (1, 1)
    print("KERNEL_OK")
</pallas_src>

<mosaic_0001>
module attributes {stable_mosaic.version = 11 : i64} {
  func.func @_protonet_kernel(%arg0: i32, %arg1: memref<7x8x512xf32, #tpu.memory_space<vmem>>, %arg2: memref<7x8x512xf32, #tpu.memory_space<vmem>>, %arg3: memref<7x8x512xf32, #tpu.memory_space<vmem>>, %arg4: memref<7x8x128xf32, #tpu.memory_space<vmem>>, %arg5: memref<7x8x128xf32, #tpu.memory_space<vmem>>, %arg6: memref<7x8x128xf32, #tpu.memory_space<vmem>>, %arg7: memref<8x384xf32, #tpu.memory_space<vmem>>, %arg8: memref<8x384xf32, #tpu.memory_space<vmem>>, %arg9: memref<8x512xf32, #tpu.memory_space<vmem>>, %arg10: memref<8x128xf32, #tpu.memory_space<vmem>>, %arg11: memref<1x8xf32, #tpu.memory_space<vmem>>, %arg12: memref<2x8xf32, #tpu.memory_space<vmem>>, %arg13: memref<8x2xf32, #tpu.memory_space<vmem>>, %arg14: memref<8x8xf32, #tpu.memory_space<vmem>>, %arg15: memref<8x512xf32, #tpu.memory_space<vmem>>, %arg16: memref<8x128xf32, #tpu.memory_space<vmem>>) attributes {dimension_semantics = [#tpu.dimension_semantics<parallel>], iteration_bounds = array<i64: 1>, scalar_prefetch = 0 : i64, scratch_operands = 0 : i64, tpu.core_type = #tpu.core_type<tc>, window_params = [{transform_indices = @transform_0, window_bounds = array<i64: 7, 8, 512>}, {transform_indices = @transform_1, window_bounds = array<i64: 7, 8, 512>}, {transform_indices = @transform_2, window_bounds = array<i64: 7, 8, 512>}, {transform_indices = @transform_3, window_bounds = array<i64: 7, 8, 128>}, {transform_indices = @transform_4, window_bounds = array<i64: 7, 8, 128>}, {transform_indices = @transform_5, window_bounds = array<i64: 7, 8, 128>}, {transform_indices = @transform_6, window_bounds = array<i64: 8, 384>}, {pipeline_mode = #tpu.pipeline_mode<synchronous>, transform_indices = @transform_7, window_bounds = array<i64: 8, 384>}, {pipeline_mode = #tpu.pipeline_mode<synchronous>, transform_indices = @transform_8, window_bounds = array<i64: 8, 512>}, {pipeline_mode = #tpu.pipeline_mode<synchronous>, transform_indices = @transform_9, window_bounds = array<i64: 8, 128>}, {pipeline_mode = #tpu.pipeline_mode<synchronous>, transform_indices = @transform_10, window_bounds = array<i64: 1, 8>}, {pipeline_mode = #tpu.pipeline_mode<synchronous>, transform_indices = @transform_11, window_bounds = array<i64: 2, 8>}, {transform_indices = @transform_12, window_bounds = array<i64: 8, 2>}, {transform_indices = @transform_13, window_bounds = array<i64: 8, 8>}, {transform_indices = @transform_14, window_bounds = array<i64: 8, 512>}, {transform_indices = @transform_15, window_bounds = array<i64: 8, 128>}]} {
    %c0 = arith.constant 0 : index
    %c0_0 = arith.constant 0 : index
    %c0_1 = arith.constant 0 : index
    %0 = vector.load %arg1[%c0, %c0_0, %c0_1] : memref<7x8x512xf32, #tpu.memory_space<vmem>>, vector<7x8x512xf32>
    %c0_2 = arith.constant 0 : index
    %c0_3 = arith.constant 0 : index
    %c0_4 = arith.constant 0 : index
    %1 = vector.load %arg2[%c0_2, %c0_3, %c0_4] : memref<7x8x512xf32, #tpu.memory_space<vmem>>, vector<7x8x512xf32>
    %c0_5 = arith.constant 0 : index
    %c0_6 = arith.constant 0 : index
    %c0_7 = arith.constant 0 : index
    %2 = vector.load %arg3[%c0_5, %c0_6, %c0_7] : memref<7x8x512xf32, #tpu.memory_space<vmem>>, vector<7x8x512xf32>
    %3 = arith.subf %0, %1 : vector<7x8x512xf32>
    %4 = arith.mulf %2, %3 : vector<7x8x512xf32>
    %5 = arith.addf %1, %4 : vector<7x8x512xf32>
    %6 = vector.extract_strided_slice %5 {offsets = [0, 0, 0], sizes = [1, 8, 512], strides = [1, 1, 1]} : vector<7x8x512xf32> to vector<1x8x512xf32>
    %7 = vector.shape_cast %6 : vector<1x8x512xf32> to vector<8x512xf32>
    %8 = vector.extract_strided_slice %5 {offsets = [1, 0, 0], sizes = [1, 8, 512], strides = [1, 1, 1]} : vector<7x8x512xf32> to vector<1x8x512xf32>
    %9 = vector.shape_cast %8 : vector<1x8x512xf32> to vector<8x512xf32>
    %10 = arith.addf %7, %9 : vector<8x512xf32>
    %11 = vector.extract_strided_slice %5 {offsets = [2, 0, 0], sizes = [1, 8, 512], strides = [1, 1, 1]} : vector<7x8x512xf32> to vector<1x8x512xf32>
    %12 = vector.shape_cast %11 : vector<1x8x512xf32> to vector<8x512xf32>
    %13 = vector.extract_strided_slice %5 {offsets = [3, 0, 0], sizes = [1, 8, 512], strides = [1, 1, 1]} : vector<7x8x512xf32> to vector<1x8x512xf32>
    %14 = vector.shape_cast %13 : vector<1x8x512xf32> to vector<8x512xf32>
    %15 = arith.addf %12, %14 : vector<8x512xf32>
    %16 = arith.addf %10, %15 : vector<8x512xf32>
    %17 = vector.extract_strided_slice %5 {offsets = [4, 0, 0], sizes = [1, 8, 512], strides = [1, 1, 1]} : vector<7x8x512xf32> to vector<1x8x512xf32>
    %18 = vector.shape_cast %17 : vector<1x8x512xf32> to vector<8x512xf32>
    %19 = vector.extract_strided_slice %5 {offsets = [5, 0, 0], sizes = [1, 8, 512], strides = [1, 1, 1]} : vector<7x8x512xf32> to vector<1x8x512xf32>
    %20 = vector.shape_cast %19 : vector<1x8x512xf32> to vector<8x512xf32>
    %21 = arith.addf %18, %20 : vector<8x512xf32>
    %22 = vector.extract_strided_slice %5 {offsets = [6, 0, 0], sizes = [1, 8, 512], strides = [1, 1, 1]} : vector<7x8x512xf32> to vector<1x8x512xf32>
    %23 = vector.shape_cast %22 : vector<1x8x512xf32> to vector<8x512xf32>
    %24 = arith.addf %21, %23 : vector<8x512xf32>
    %25 = arith.addf %16, %24 : vector<8x512xf32>
    %cst = arith.constant 0.142857149 : f32
    %26 = vector.broadcast %cst : f32 to vector<8x512xf32>
    %27 = arith.mulf %25, %26 : vector<8x512xf32>
    %c0_8 = arith.constant 0 : index
    %c0_9 = arith.constant 0 : index
    %28 = vector.load %arg15[%c0_8, %c0_9] : memref<8x512xf32, #tpu.memory_space<vmem>>, vector<8x512xf32>
    tpu.vector_store %arg15[%c0_8, %c0_9], %27 {strides = array<i32>} : memref<8x512xf32, #tpu.memory_space<vmem>>, vector<8x512xf32>,
    %c0_10 = arith.constant 0 : index
    %c0_11 = arith.constant 0 : index
    %c0_12 = arith.constant 0 : index
    %29 = vector.load %arg4[%c0_10, %c0_11, %c0_12] : memref<7x8x128xf32, #tpu.memory_space<vmem>>, vector<7x8x128xf32>
    %c0_13 = arith.constant 0 : index
    %c0_14 = arith.constant 0 : index
    %c0_15 = arith.constant 0 : index
    %30 = vector.load %arg5[%c0_13, %c0_14, %c0_15] : memref<7x8x128xf32, #tpu.memory_space<vmem>>, vector<7x8x128xf32>
    %c0_16 = arith.constant 0 : index
    %c0_17 = arith.constant 0 : index
    %c0_18 = arith.constant 0 : index
    %31 = vector.load %arg6[%c0_16, %c0_17, %c0_18] : memref<7x8x128xf32, #tpu.memory_space<vmem>>, vector<7x8x128xf32>
    %32 = arith.subf %29, %30 : vector<7x8x128xf32>
    %33 = arith.mulf %31, %32 : vector<7x8x128xf32>
    %34 = arith.addf %30, %33 : vector<7x8x128xf32>
    %35 = vector.extract_strided_slice %34 {offsets = [0, 0, 0], sizes = [1, 8, 128], strides = [1, 1, 1]} : vector<7x8x128xf32> to vector<1x8x128xf32>
    %36 = vector.shape_cast %35 : vector<1x8x128xf32> to vector<8x128xf32>
    %37 = vector.extract_strided_slice %34 {offsets = [1, 0, 0], sizes = [1, 8, 128], strides = [1, 1, 1]} : vector<7x8x128xf32> to vector<1x8x128xf32>
    %38 = vector.shape_cast %37 : vector<1x8x128xf32> to vector<8x128xf32>
    %39 = arith.addf %36, %38 : vector<8x128xf32>
    %40 = vector.extract_strided_slice %34 {offsets = [2, 0, 0], sizes = [1, 8, 128], strides = [1, 1, 1]} : vector<7x8x128xf32> to vector<1x8x128xf32>
    %41 = vector.shape_cast %40 : vector<1x8x128xf32> to vector<8x128xf32>
    %42 = vector.extract_strided_slice %34 {offsets = [3, 0, 0], sizes = [1, 8, 128], strides = [1, 1, 1]} : vector<7x8x128xf32> to vector<1x8x128xf32>
    %43 = vector.shape_cast %42 : vector<1x8x128xf32> to vector<8x128xf32>
    %44 = arith.addf %41, %43 : vector<8x128xf32>
    %45 = arith.addf %39, %44 : vector<8x128xf32>
    %46 = vector.extract_strided_slice %34 {offsets = [4, 0, 0], sizes = [1, 8, 128], strides = [1, 1, 1]} : vector<7x8x128xf32> to vector<1x8x128xf32>
    %47 = vector.shape_cast %46 : vector<1x8x128xf32> to vector<8x128xf32>
    %48 = vector.extract_strided_slice %34 {offsets = [5, 0, 0], sizes = [1, 8, 128], strides = [1, 1, 1]} : vector<7x8x128xf32> to vector<1x8x128xf32>
    %49 = vector.shape_cast %48 : vector<1x8x128xf32> to vector<8x128xf32>
    %50 = arith.addf %47, %49 : vector<8x128xf32>
    %51 = vector.extract_strided_slice %34 {offsets = [6, 0, 0], sizes = [1, 8, 128], strides = [1, 1, 1]} : vector<7x8x128xf32> to vector<1x8x128xf32>
    %52 = vector.shape_cast %51 : vector<1x8x128xf32> to vector<8x128xf32>
    %53 = arith.addf %50, %52 : vector<8x128xf32>
    %54 = arith.addf %45, %53 : vector<8x128xf32>
    %cst_19 = arith.constant 0.142857149 : f32
    %55 = vector.broadcast %cst_19 : f32 to vector<8x128xf32>
    %56 = arith.mulf %54, %55 : vector<8x128xf32>
    %c0_20 = arith.constant 0 : index
    %c0_21 = arith.constant 0 : index
    %57 = vector.load %arg16[%c0_20, %c0_21] : memref<8x128xf32, #tpu.memory_space<vmem>>, vector<8x128xf32>
    tpu.vector_store %arg16[%c0_20, %c0_21], %56 {strides = array<i32>} : memref<8x128xf32, #tpu.memory_space<vmem>>, vector<8x128xf32>,
    %c0_22 = arith.constant 0 : index
    %c0_23 = arith.constant 0 : index
    %58 = vector.load %arg7[%c0_22, %c0_23] : memref<8x384xf32, #tpu.memory_space<vmem>>, vector<8x384xf32>
    %59 = arith.mulf %58, %58 : vector<8x384xf32>
    %cst_24 = arith.constant dense<0.000000e+00> : vector<8xf32>
    %60 = vector.multi_reduction <add>, %59, %cst_24 [1] : vector<8x384xf32> to vector<8xf32>
    %61 = vector.shape_cast %60 : vector<8xf32> to vector<8x1xf32>
    %62 = arith.mulf %27, %27 : vector<8x512xf32>
    %cst_25 = arith.constant dense<0.000000e+00> : vector<8xf32>
    %63 = vector.multi_reduction <add>, %62, %cst_25 [1] : vector<8x512xf32> to vector<8xf32>
    %64 = vector.shape_cast %63 : vector<8xf32> to vector<8x1xf32>
    %65 = arith.addf %61, %64 : vector<8x1xf32>
    %66 = arith.mulf %56, %56 : vector<8x128xf32>
    %cst_26 = arith.constant dense<0.000000e+00> : vector<8xf32>
    %67 = vector.multi_reduction <add>, %66, %cst_26 [1] : vector<8x128xf32> to vector<8xf32>
    %68 = vector.shape_cast %67 : vector<8xf32> to vector<8x1xf32>
    %69 = arith.addf %65, %68 : vector<8x1xf32>
    %c0_27 = arith.constant 0 : index
    %c0_28 = arith.constant 0 : index
    %70 = vector.load %arg8[%c0_27, %c0_28] : memref<8x384xf32, #tpu.memory_space<vmem>>, vector<8x384xf32>
    %cst_29 = arith.constant dense<0.000000e+00> : vector<8x8xf32>
    %71 = tpu.matmul %58, %70, %cst_29 {dimension_numbers = #tpu.dot_dimension_numbers<[1], [1], [0], [0], [0, 0, 1, 0], [], []>} : vector<8x384xf32>, vector<8x384xf32>, vector<8x8xf32> -> vector<8x8xf32>
    %c0_30 = arith.constant 0 : index
    %c0_31 = arith.constant 0 : index
    %72 = vector.load %arg9[%c0_30, %c0_31] : memref<8x512xf32, #tpu.memory_space<vmem>>, vector<8x512xf32>
    %cst_32 = arith.constant dense<0.000000e+00> : vector<8x8xf32>
    %73 = tpu.matmul %27, %72, %cst_32 {dimension_numbers = #tpu.dot_dimension_numbers<[1], [1], [0], [0], [0, 0, 1, 0], [], []>} : vector<8x512xf32>, vector<8x512xf32>, vector<8x8xf32> -> vector<8x8xf32>
    %74 = arith.addf %71, %73 : vector<8x8xf32>
    %c0_33 = arith.constant 0 : index
    %c0_34 = arith.constant 0 : index
    %75 = vector.load %arg10[%c0_33, %c0_34] : memref<8x128xf32, #tpu.memory_space<vmem>>, vector<8x128xf32>
    %cst_35 = arith.constant dense<0.000000e+00> : vector<8x8xf32>
    %76 = tpu.matmul %56, %75, %cst_35 {dimension_numbers = #tpu.dot_dimension_numbers<[1], [1], [0], [0], [0, 0, 1, 0], [], []>} : vector<8x128xf32>, vector<8x128xf32>, vector<8x8xf32> -> vector<8x8xf32>
    %77 = arith.addf %74, %76 : vector<8x8xf32>
    %c0_36 = arith.constant 0 : index
    %c0_37 = arith.constant 0 : index
    %78 = vector.load %arg11[%c0_36, %c0_37] : memref<1x8xf32, #tpu.memory_space<vmem>>, vector<1x8xf32>
    %79 = vector.broadcast %69 : vector<8x1xf32> to vector<8x8xf32>
    %80 = vector.broadcast %78 : vector<1x8xf32> to vector<8x8xf32>
    %81 = arith.addf %79, %80 : vector<8x8xf32>
    %cst_38 = arith.constant 2.000000e+00 : f32
    %82 = vector.broadcast %cst_38 : f32 to vector<8x8xf32>
    %83 = arith.mulf %82, %77 : vector<8x8xf32>
    %84 = arith.subf %81, %83 : vector<8x8xf32>
    %cst_39 = arith.constant 0.000000e+00 : f32
    %85 = vector.broadcast %cst_39 : f32 to vector<8x8xf32>
    %86 = arith.maximumf %84, %85 : vector<8x8xf32>
    %87 = math.sqrt %86 : vector<8x8xf32>
    %cst_40 = arith.constant 1.000000e+00 : f32
    %88 = vector.broadcast %cst_40 : f32 to vector<8x8xf32>
    %89 = arith.divf %88, %87 : vector<8x8xf32>
    %cst_41 = arith.constant dense<0x7F800000> : vector<8xf32>
    %90 = vector.multi_reduction <minimumf>, %89, %cst_41 [1] : vector<8x8xf32> to vector<8xf32>
    %91 = vector.shape_cast %90 : vector<8xf32> to vector<8x1xf32>
    %92 = vector.broadcast %91 : vector<8x1xf32> to vector<8x8xf32>
    %93 = arith.subf %89, %92 : vector<8x8xf32>
    %cst_42 = arith.constant dense<0xFF800000> : vector<8xf32>
    %94 = vector.multi_reduction <maximumf>, %93, %cst_42 [1] : vector<8x8xf32> to vector<8xf32>
    %95 = vector.shape_cast %94 : vector<8xf32> to vector<8x1xf32>
    %96 = vector.broadcast %95 : vector<8x1xf32> to vector<8x8xf32>
    %97 = arith.divf %93, %96 : vector<8x8xf32>
    %c0_43 = arith.constant 0 : index
    %c0_44 = arith.constant 0 : index
    %98 = vector.load %arg14[%c0_43, %c0_44] : memref<8x8xf32, #tpu.memory_space<vmem>>, vector<8x8xf32>
    tpu.vector_store %arg14[%c0_43, %c0_44], %97 {strides = array<i32>} : memref<8x8xf32, #tpu.memory_space<vmem>>, vector<8x8xf32>,
    %c0_45 = arith.constant 0 : index
    %c0_46 = arith.constant 0 : index
    %99 = vector.load %arg12[%c0_45, %c0_46] : memref<2x8xf32, #tpu.memory_space<vmem>>, vector<2x8xf32>
    %100 = vector.extract_strided_slice %99 {offsets = [0, 0], sizes = [1, 8], strides = [1, 1]} : vector<2x8xf32> to vector<1x8xf32>
    %101 = vector.broadcast %100 : vector<1x8xf32> to vector<8x8xf32>
    %102 = arith.mulf %97, %101 : vector<8x8xf32>
    %cst_47 = arith.constant dense<0.000000e+00> : vector<8xf32>
    %103 = vector.multi_reduction <add>, %102, %cst_47 [1] : vector<8x8xf32> to vector<8xf32>
    %104 = vector.shape_cast %103 : vector<8xf32> to vector<8x1xf32>
    %105 = vector.extract_strided_slice %99 {offsets = [1, 0], sizes = [1, 8], strides = [1, 1]} : vector<2x8xf32> to vector<1x8xf32>
    %106 = vector.broadcast %105 : vector<1x8xf32> to vector<8x8xf32>
    %107 = arith.mulf %97, %106 : vector<8x8xf32>
    %cst_48 = arith.constant dense<0.000000e+00> : vector<8xf32>
    %108 = vector.multi_reduction <add>, %107, %cst_48 [1] : vector<8x8xf32> to vector<8xf32>
    %109 = vector.shape_cast %108 : vector<8xf32> to vector<8x1xf32>
    %110 = arith.maximumf %104, %109 : vector<8x1xf32>
    %111 = arith.subf %104, %110 : vector<8x1xf32>
    %112 = math.exp %111 : vector<8x1xf32>
    %113 = arith.subf %109, %110 : vector<8x1xf32>
    %114 = math.exp %113 : vector<8x1xf32>
    %115 = arith.addf %112, %114 : vector<8x1xf32>
    %cst_49 = arith.constant 1.000000e+00 : f32
    %116 = vector.broadcast %cst_49 : f32 to vector<8x1xf32>
    %117 = arith.divf %116, %115 : vector<8x1xf32>
    %118 = arith.mulf %112, %117 : vector<8x1xf32>
    %c0_50 = arith.constant 0 : index
    %c0_51 = arith.constant 0 : index
    %119 = vector.load %arg13[%c0_50, %c0_51] : memref<8x2xf32, #tpu.memory_space<vmem>>, vector<8x1xf32>
    tpu.vector_store %arg13[%c0_50, %c0_51], %118 {strides = array<i32>} : memref<8x2xf32, #tpu.memory_space<vmem>>, vector<8x1xf32>,
    %120 = arith.mulf %114, %117 : vector<8x1xf32>
    %c0_52 = arith.constant 0 : index
    %c1 = arith.constant 1 : index
    %121 = vector.load %arg13[%c0_52, %c1] : memref<8x2xf32, #tpu.memory_space<vmem>>, vector<8x1xf32>
    tpu.vector_store %arg13[%c0_52, %c1], %120 {strides = array<i32>} : memref<8x2xf32, #tpu.memory_space<vmem>>, vector<8x1xf32>,
    return
  }
  func.func @transform_0(%arg0: i32) -> (i32, i32, i32) {
    %c0_i32 = arith.constant 0 : i32
    %c0_i32_0 = arith.constant 0 : i32
    %c0_i32_1 = arith.constant 0 : i32
    return %c0_i32, %arg0, %c0_i32_0 : i32, i32, i32
  }
  func.func @transform_1(%arg0: i32) -> (i32, i32, i32) {
    %c0_i32 = arith.constant 0 : i32
    %c0_i32_0 = arith.constant 0 : i32
    %c0_i32_1 = arith.constant 0 : i32
    return %c0_i32, %arg0, %c0_i32_0 : i32, i32, i32
  }
  func.func @transform_2(%arg0: i32) -> (i32, i32, i32) {
    %c0_i32 = arith.constant 0 : i32
    %c0_i32_0 = arith.constant 0 : i32
    %c0_i32_1 = arith.constant 0 : i32
    return %c0_i32, %arg0, %c0_i32_0 : i32, i32, i32
  }
  func.func @transform_3(%arg0: i32) -> (i32, i32, i32) {
    %c0_i32 = arith.constant 0 : i32
    %c0_i32_0 = arith.constant 0 : i32
    %c0_i32_1 = arith.constant 0 : i32
    return %c0_i32, %arg0, %c0_i32_0 : i32, i32, i32
  }
  func.func @transform_4(%arg0: i32) -> (i32, i32, i32) {
    %c0_i32 = arith.constant 0 : i32
    %c0_i32_0 = arith.constant 0 : i32
    %c0_i32_1 = arith.constant 0 : i32
    return %c0_i32, %arg0, %c0_i32_0 : i32, i32, i32
  }
  func.func @transform_5(%arg0: i32) -> (i32, i32, i32) {
    %c0_i32 = arith.constant 0 : i32
    %c0_i32_0 = arith.constant 0 : i32
    %c0_i32_1 = arith.constant 0 : i32
    return %c0_i32, %arg0, %c0_i32_0 : i32, i32, i32
  }
  func.func @transform_6(%arg0: i32) -> (i32, i32) {
    %c0_i32 = arith.constant 0 : i32
    %c0_i32_0 = arith.constant 0 : i32
    return %arg0, %c0_i32 : i32, i32
  }
  func.func @transform_7(%arg0: i32) -> (i32, i32) {
    %c0_i32 = arith.constant 0 : i32
    %c0_i32_0 = arith.constant 0 : i32
    %c0_i32_1 = arith.constant 0 : i32
    return %c0_i32, %c0_i32_0 : i32, i32
  }
  func.func @transform_8(%arg0: i32) -> (i32, i32) {
    %c0_i32 = arith.constant 0 : i32
    %c0_i32_0 = arith.constant 0 : i32
    %c0_i32_1 = arith.constant 0 : i32
    return %c0_i32, %c0_i32_0 : i32, i32
  }
  func.func @transform_9(%arg0: i32) -> (i32, i32) {
    %c0_i32 = arith.constant 0 : i32
    %c0_i32_0 = arith.constant 0 : i32
    %c0_i32_1 = arith.constant 0 : i32
    return %c0_i32, %c0_i32_0 : i32, i32
  }
  func.func @transform_10(%arg0: i32) -> (i32, i32) {
    %c0_i32 = arith.constant 0 : i32
    %c0_i32_0 = arith.constant 0 : i32
    %c0_i32_1 = arith.constant 0 : i32
    return %c0_i32, %c0_i32_0 : i32, i32
  }
  func.func @transform_11(%arg0: i32) -> (i32, i32) {
    %c0_i32 = arith.constant 0 : i32
    %c0_i32_0 = arith.constant 0 : i32
    %c0_i32_1 = arith.constant 0 : i32
    return %c0_i32, %c0_i32_0 : i32, i32
  }
  func.func @transform_12(%arg0: i32) -> (i32, i32) {
    %c0_i32 = arith.constant 0 : i32
    %c0_i32_0 = arith.constant 0 : i32
    return %arg0, %c0_i32 : i32, i32
  }
  func.func @transform_13(%arg0: i32) -> (i32, i32) {
    %c0_i32 = arith.constant 0 : i32
    %c0_i32_0 = arith.constant 0 : i32
    return %arg0, %c0_i32 : i32, i32
  }
  func.func @transform_14(%arg0: i32) -> (i32, i32) {
    %c0_i32 = arith.constant 0 : i32
    %c0_i32_0 = arith.constant 0 : i32
    return %arg0, %c0_i32 : i32, i32
  }
  func.func @transform_15(%arg0: i32) -> (i32, i32) {
    %c0_i32 = arith.constant 0 : i32
    %c0_i32_0 = arith.constant 0 : i32
    return %arg0, %c0_i32 : i32, i32
  }
}

</mosaic_0001>

<bundles_post_ra>
// kernel: tile.14
= control target key start
LH: loop header
LB: loop body
LE: loop exit
PB: predicated region body
PF: predicated region fallthrough
CT: control target
= control target key end

     0   :  { %vm4_vm0 = vcmask 1046532   ;;  %vm20_vm1 = vcmask 15360   ;;  %vm41_vm2 = vcmask 31744   ;;  %s1079_s22 = smov 126   ;;  %s1080_s23 = smov 119   ;;  %vm63_vm3 = vcmask 48128   ;;  %s1917_s0 = inlined_call_operand.vmem [shape: f32[7,72,7], index: 0, kind: input, shape index: {}]   ;;  %s1918_s1 = inlined_call_operand.vmem [shape: f32[7,504], index: 1, kind: output, shape index: {}]  }
   0x1   :  { %v804_v0 = vld [vmem:[%s1917_s0 + $0x12] ss:$72 sm:$0xf]   ;;  %v821_v6 = vld [vmem:[%s1917_s0 + $0x11] ss:$72 sm:$0xf]  }
   0x2   :  { %v805_v1 = vld [vmem:[%s1917_s0 + $0x12] ss:$72 sm:$0x70]   ;;  %v822_v7 = vld [vmem:[%s1917_s0 + $0x11] ss:$72 sm:$0x70]  }
   0x3   :  { %v13_v2 = vsel %vm4_vm0, %v805_v1, %v804_v0  ;;  %v806_v3 = vld [vmem:[%s1917_s0 + $0x12] ss:$72 sm:$0xf]   ;;  %v78_v9 = vsel %vm4_vm0, %v822_v7, %v821_v6  ;;  %v809_v10 = vld [vmem:[%s1917_s0 + $0x24] ss:$72 sm:$0xf]  }
   0x4   :  { %v807_v4 = vld [vmem:[%s1917_s0 + $0x12] ss:$72 sm:$0x70]   ;;  %v810_v11 = vld [vmem:[%s1917_s0 + $0x24] ss:$72 sm:$0x70]   ;;  %79 = vrot.lane.b32.xlu1 %v78_v9, %s1080_s23 }
   0x5   :  { %v19_v5 = vsel %vm4_vm0, %v807_v4, %v806_v3  ;;  %v34_v12 = vsel %vm4_vm0, %v810_v11, %v809_v10  ;;  %v811_v13 = vld [vmem:[%s1917_s0 + $0x24] ss:$72 sm:$0xf]   ;;  %v815_v16 = vld [vmem:[%s1917_s0 + $0x36] ss:$72 sm:$0xf]  }
   0x6   :  { %v21_v8 = vsel %vm20_vm1, %v19_v5, %v13_v2  ;;  %v812_v14 = vld [vmem:[%s1917_s0 + $0x24] ss:$72 sm:$0x70]   ;;  %v816_v18 = vld [vmem:[%s1917_s0 + $0x36] ss:$72 sm:$0x70]  }
   0x7   :  { %22 = vrot.lane.b32.xlu0 %v21_v8, %s1079_s22  ;;  %v40_v15 = vsel %vm4_vm0, %v812_v14, %v811_v13  ;;  %v817_v19 = vld [vmem:[%s1917_s0 + $0x36] ss:$72 sm:$0xf]   ;;  %v56_v20 = vsel %vm4_vm0, %v816_v18, %v815_v16  ;;  %v823_v22 = vld [vmem:[%s1917_s0 + $0x23] ss:$72 sm:$0xf]  }
   0x8   :  { %v42_v17 = vsel %vm41_vm2, %v40_v15, %v34_v12  ;;  %v818_v21 = vld [vmem:[%s1917_s0 + $0x36] ss:$72 sm:$0x70]   ;;  %s1081_s9 = smov 124   ;;  %s1082_s16 = smov 122   ;;  %vm6_vm4 = vcmask 56320  }
   0x9   :  { %v62_v23 = vsel %vm4_vm0, %v818_v21, %v817_v19  ;;  %v824_v24 = vld [vmem:[%s1917_s0 + $0x23] ss:$72 sm:$0x70]   ;;  %v826_v27 = vld [vmem:[%s1917_s0 + $0x35] ss:$72 sm:$0xf]  }
   0xa   :  { %v64_v25 = vsel %vm63_vm3, %v62_v23, %v56_v20  ;;  %v88_v26 = vsel %vm4_vm0, %v824_v24, %v823_v22  ;;  %v827_v28 = vld [vmem:[%s1917_s0 + $0x35] ss:$72 sm:$0x70]   ;;  %v829_v29 = vld [vmem:[%s1917_s0 + $0x47] ss:$72 sm:$0xf]  }
   0xb   :  { %43 = vrot.lane.b32.xlu0 %v42_v17, %s1081_s9  ;;  %65 = vrot.lane.b32.xlu1 %v64_v25, %s1082_s16  ;;  %v830_v30 = vld [vmem:[%s1917_s0 + $0x47] ss:$72 sm:$0x70]   ;;  %v99_v31 = vsel %vm4_vm0, %v827_v28, %v826_v27  ;;  %s1083_s21 = smov 117   ;;  %s1084_s26 = smov 115   ;;  %vm24_vm5 = vcmask 39936  }
   0xc   :  { %v832_v32 = vld [vmem:[%s1917_s0 + $0x10] ss:$72 sm:$0xf]   ;;  %v110_v34 = vsel %vm4_vm0, %v830_v30, %v829_v29  ;;  %v834_v35 = vld [vmem:[%s1917_s0 + $0x22] ss:$72 sm:$0xf]  }
   0xd   :  { %v833_v33 = vld [vmem:[%s1917_s0 + $0x10] ss:$72 sm:$0x70]   ;;  %v835_v36 = vld [vmem:[%s1917_s0 + $0x22] ss:$72 sm:$0x70]  }
   0xe   :  { %v121_v37 = vsel %vm4_vm0, %v833_v33, %v832_v32  ;;  %s1085_s2 = smov 113   ;;  %v837_v38 = vld [vmem:[%s1917_s0 + $0x34] ss:$72 sm:$0xf]   ;;  %v131_v40 = vsel %vm4_vm0, %v835_v36, %v834_v35  ;;  %s1086_s7 = smov 112   ;;  %vm27_vm6 = vcmask 1048560  }
   0xf   :  { %89 = vrot.lane.b32.xlu0 %v88_v26, %s1083_s21  ;;  %100 = vrot.lane.b32.xlu1 %v99_v31, %s1084_s26  ;;  %v838_v39 = vld [vmem:[%s1917_s0 + $0x34] ss:$72 sm:$0x70]   ;;  %v840_v41 = vld [vmem:[%s1917_s0 + $0x46] ss:$72 sm:$0xf]  }
  0x10   :  { %v841_v42 = vld [vmem:[%s1917_s0 + $0x46] ss:$72 sm:$0x70]   ;;  %v142_v43 = vsel %vm4_vm0, %v838_v39, %v837_v38  ;;  %s1087_s12 = smov 110   ;;  %s1088_s17 = smov 108   ;;  %vm81_vm7 = vcmask 1032120  }
  0x11   :  { %v843_v44 = vld [vmem:[%s1917_s0 + $0xf] ss:$72 sm:$0xf]   ;;  %v153_v46 = vsel %vm4_vm0, %v841_v42, %v840_v41  ;;  %v845_v47 = vld [vmem:[%s1917_s0 + $0x21] ss:$72 sm:$0xf]  }
  0x12   :  { %v844_v45 = vld [vmem:[%s1917_s0 + $0xf] ss:$72 sm:$0x70]   ;;  %v846_v48 = vld [vmem:[%s1917_s0 + $0x21] ss:$72 sm:$0x70]  }
  0x13   :  { %111 = vrot.lane.b32.xlu0 %v110_v34, %s1085_s2  ;;  %122 = vrot.lane.b32.xlu1 %v121_v37, %s1086_s7  ;;  %v164_v49 = vsel %vm4_vm0, %v844_v45, %v843_v44  ;;  %s1089_s22 = smov 106   ;;  %v848_v50 = vld [vmem:[%s1917_s0 + $0x33] ss:$72 sm:$0xf]   ;;  %v174_v52 = vsel %vm4_vm0, %v846_v48, %v845_v47  ;;  %s1090_s27 = smov 105   ;;  %vm45_vm8 = vcmask 23552  }
  0x14   :  { %v849_v51 = vld [vmem:[%s1917_s0 + $0x33] ss:$72 sm:$0x70]   ;;  %v851_v53 = vld [vmem:[%s1917_s0 + $0x45] ss:$72 sm:$0xf]  }
  0x15   :  { %v852_v54 = vld [vmem:[%s1917_s0 + $0x45] ss:$72 sm:$0x70]   ;;  %v185_v55 = vsel %vm4_vm0, %v849_v51, %v848_v50  ;;  %s1091_s3 = smov 103   ;;  %s1092_s8 = smov 101   ;;  %vm48_vm9 = vcmask 1048544  }
  0x16   :  { %v854_v56 = vld [vmem:[%s1917_s0 + $0xe] ss:$72 sm:$0xf]   ;;  %v196_v58 = vsel %vm4_vm0, %v852_v54, %v851_v53  ;;  %v856_v59 = vld [vmem:[%s1917_s0 + $0x20] ss:$72 sm:$0xf]  }
  0x17   :  { %132 = vrot.lane.b32.xlu0 %v131_v40, %s1087_s12  ;;  %143 = vrot.lane.b32.xlu1 %v142_v43, %s1088_s17  ;;  %v855_v57 = vld [vmem:[%s1917_s0 + $0xe] ss:$72 sm:$0x70]   ;;  %v857_v60 = vld [vmem:[%s1917_s0 + $0x20] ss:$72 sm:$0x70]  }
  0x18   :  { %v207_v61 = vsel %vm4_vm0, %v855_v57, %v854_v56  ;;  %s1093_s13 = smov 99   ;;  %v859_v62 = vld [vmem:[%s1917_s0 + $0x32] ss:$72 sm:$0xf]   ;;  %v217_v0 = vsel %vm4_vm0, %v857_v60, %v856_v59  ;;  %s1094_s18 = smov 98   ;;  %vm67_vm10 = vcmask 7168  }
  0x19   :  { %v860_v63 = vld [vmem:[%s1917_s0 + $0x32] ss:$72 sm:$0x70]   ;;  %v862_v1 = vld [vmem:[%s1917_s0 + $0x44] ss:$72 sm:$0xf]  }
  0x1a   :  { %v863_v2 = vld [vmem:[%s1917_s0 + $0x44] ss:$72 sm:$0x70]   ;;  %v228_v3 = vsel %vm4_vm0, %v860_v63, %v859_v62  ;;  %s1095_s23 = smov 96   ;;  %s1096_s28 = smov 94   ;;  %vm70_vm11 = vcmask 1048528  }
  0x1b   :  { %154 = vrot.lane.b32.xlu0 %v153_v46, %s1089_s22  ;;  %165 = vrot.lane.b32.xlu1 %v164_v49, %s1090_s27  ;;  %v865_v4 = vld [vmem:[%s1917_s0 + $0xd] ss:$72 sm:$0xf]   ;;  %v239_v6 = vsel %vm4_vm0, %v863_v2, %v862_v1  ;;  %v867_v7 = vld [vmem:[%s1917_s0 + $0x1f] ss:$72 sm:$0xf]  }
  0x1c   :  { %v866_v5 = vld [vmem:[%s1917_s0 + $0xd] ss:$72 sm:$0x70]   ;;  %v868_v8 = vld [vmem:[%s1917_s0 + $0x1f] ss:$72 sm:$0x70]  }
  0x1d   :  { %v250_v9 = vsel %vm4_vm0, %v866_v5, %v865_v4  ;;  %s1097_s4 = smov 92   ;;  %v870_v10 = vld [vmem:[%s1917_s0 + $0x31] ss:$72 sm:$0xf]   ;;  %v260_v12 = vsel %vm4_vm0, %v868_v8, %v867_v7  ;;  %s1098_s9 = smov 91   ;;  %vm91_vm12 = vcmask 1015720  }
  0x1e   :  { %v871_v11 = vld [vmem:[%s1917_s0 + $0x31] ss:$72 sm:$0x70]   ;;  %v873_v13 = vld [vmem:[%s1917_s0 + $0x43] ss:$72 sm:$0xf]  }
  0x1f   :  { %175 = vrot.lane.b32.xlu0 %v174_v52, %s1091_s3  ;;  %186 = vrot.lane.b32.xlu1 %v185_v55, %s1092_s8  ;;  %v874_v14 = vld [vmem:[%s1917_s0 + $0x43] ss:$72 sm:$0x70]   ;;  %v271_v15 = vsel %vm4_vm0, %v871_v11, %v870_v10  ;;  %s1099_s14 = smov 89   ;;  %s1100_s19 = smov 87   ;;  %vm102_vm13 = vcmask 999320  }
  0x20   :  { %v876_v16 = vld [vmem:[%s1917_s0 + $0xc] ss:$72 sm:$0xf]   ;;  %v282_v18 = vsel %vm4_vm0, %v874_v14, %v873_v13  ;;  %v878_v19 = vld [vmem:[%s1917_s0 + $0x1e] ss:$72 sm:$0xf]  }
  0x21   :  { %v877_v17 = vld [vmem:[%s1917_s0 + $0xc] ss:$72 sm:$0x70]   ;;  %v879_v20 = vld [vmem:[%s1917_s0 + $0x1e] ss:$72 sm:$0x70]  }
  0x22   :  { %v293_v21 = vsel %vm4_vm0, %v877_v17, %v876_v16  ;;  %s1101_s24 = smov 85   ;;  %v881_v22 = vld [vmem:[%s1917_s0 + $0x30] ss:$72 sm:$0xf]   ;;  %v303_v24 = vsel %vm4_vm0, %v879_v20, %v878_v19  ;;  %s1102_s29 = smov 84   ;;  %vm113_vm14 = vcmask 982920  }
  0x23   :  { %197 = vrot.lane.b32.xlu0 %v196_v58, %s1093_s13  ;;  %208 = vrot.lane.b32.xlu1 %v207_v61, %s1094_s18  ;;  %v882_v23 = vld [vmem:[%s1917_s0 + $0x30] ss:$72 sm:$0x70]   ;;  %v884_v25 = vld [vmem:[%s1917_s0 + $0x42] ss:$72 sm:$0xf]  }
  0x24   :  { %v885_v26 = vld [vmem:[%s1917_s0 + $0x42] ss:$72 sm:$0x70]   ;;  %v314_v27 = vsel %vm4_vm0, %v882_v23, %v881_v22  ;;  %s1103_s5 = smov 82   ;;  %s1104_s10 = smov 80   ;;  %vm124_vm15 = vcmask 974720  }
  0x25   :  { %v887_v28 = vld [vmem:[%s1917_s0 + $0xb] ss:$72 sm:$0xf]   ;;  %v325_v30 = vsel %vm4_vm0, %v885_v26, %v884_v25  ;;  %v889_v31 = vld [vmem:[%s1917_s0 + $0x1d] ss:$72 sm:$0xf]  }
  0x26   :  { %v888_v29 = vld [vmem:[%s1917_s0 + $0xb] ss:$72 sm:$0x70]   ;;  %v890_v32 = vld [vmem:[%s1917_s0 + $0x1d] ss:$72 sm:$0x70]  }
  0x27   :  { %218 = vrot.lane.b32.xlu0 %v217_v0, %s1095_s23  ;;  %229 = vrot.lane.b32.xlu1 %v228_v3, %s1096_s28  ;;  %v336_v33 = vsel %vm4_vm0, %v888_v29, %v887_v28  ;;  %s1105_s15 = smov 78   ;;  %v892_v34 = vld [vmem:[%s1917_s0 + $0x2f] ss:$72 sm:$0xf]   ;;  %v346_v36 = vsel %vm4_vm0, %v890_v32, %v889_v31  ;;  %s1106_s20 = smov 77   ;;  %vm134_vm1 = vcmask 958320  }
  0x28   :  { %v893_v35 = vld [vmem:[%s1917_s0 + $0x2f] ss:$72 sm:$0x70]   ;;  %v895_v37 = vld [vmem:[%s1917_s0 + $0x41] ss:$72 sm:$0xf]  }
  0x29   :  { %v896_v38 = vld [vmem:[%s1917_s0 + $0x41] ss:$72 sm:$0x70]   ;;  %v357_v39 = vsel %vm4_vm0, %v893_v35, %v892_v34  ;;  %s1107_s25 = smov 75   ;;  %s1108_s30 = smov 73   ;;  %vm145_vm2 = vcmask 941920  }
  0x2a   :  { %v898_v40 = vld [vmem:[%s1917_s0 + $0xa] ss:$72 sm:$0xf]   ;;  %v368_v42 = vsel %vm4_vm0, %v896_v38, %v895_v37  ;;  %v900_v43 = vld [vmem:[%s1917_s0 + $0x1c] ss:$72 sm:$0xf]  }
  0x2b   :  { %240 = vrot.lane.b32.xlu0 %v239_v6, %s1097_s4  ;;  %251 = vrot.lane.b32.xlu1 %v250_v9, %s1098_s9  ;;  %v899_v41 = vld [vmem:[%s1917_s0 + $0xa] ss:$72 sm:$0x70]   ;;  %v901_v44 = vld [vmem:[%s1917_s0 + $0x1c] ss:$72 sm:$0x70]  }
  0x2c   :  { %v379_v45 = vsel %vm4_vm0, %v899_v41, %v898_v40  ;;  %s1109_s6 = smov 71   ;;  %v903_v46 = vld [vmem:[%s1917_s0 + $0x2e] ss:$72 sm:$0xf]   ;;  %v389_v48 = vsel %vm4_vm0, %v901_v44, %v900_v43  ;;  %s1110_s11 = smov 70   ;;  %vm156_vm3 = vcmask 925520  }
  0x2d   :  { %v904_v47 = vld [vmem:[%s1917_s0 + $0x2e] ss:$72 sm:$0x70]   ;;  %v906_v49 = vld [vmem:[%s1917_s0 + $0x40] ss:$72 sm:$0xf]  }
  0x2e   :  { %v907_v50 = vld [vmem:[%s1917_s0 + $0x40] ss:$72 sm:$0x70]   ;;  %v400_v51 = vsel %vm4_vm0, %v904_v47, %v903_v46  ;;  %s1111_s16 = smov 68   ;;  %s1112_s21 = smov 66  }
  0x2f   :  { %261 = vrot.lane.b32.xlu0 %v260_v12, %s1099_s14  ;;  %272 = vrot.lane.b32.xlu1 %v271_v15, %s1100_s19  ;;  %v909_v52 = vld [vmem:[%s1917_s0 + $0x9] ss:$72 sm:$0xf]   ;;  %v411_v54 = vsel %vm4_vm0, %v907_v50, %v906_v49  ;;  %v911_v55 = vld [vmem:[%s1917_s0 + $0x1b] ss:$72 sm:$0xf]  }
  0x30   :  { %v910_v53 = vld [vmem:[%s1917_s0 + $0x9] ss:$72 sm:$0x70]   ;;  %v912_v56 = vld [vmem:[%s1917_s0 + $0x1b] ss:$72 sm:$0x70]  }
  0x31   :  { %v422_v57 = vsel %vm4_vm0, %v910_v53, %v909_v52  ;;  %s1113_s26 = smov 64   ;;  %v914_v58 = vld [vmem:[%s1917_s0 + $0x2d] ss:$72 sm:$0xf]   ;;  %v432_v60 = vsel %vm4_vm0, %v912_v56, %v911_v55  ;;  %s1116_s18 = smov 59  }
  0x32   :  { %v915_v59 = vld [vmem:[%s1917_s0 + $0x2d] ss:$72 sm:$0x70]   ;;  %v917_v61 = vld [vmem:[%s1917_s0 + $0x3f] ss:$72 sm:$0xf]  }
  0x33   :  { %283 = vrot.lane.b32.xlu0 %v282_v18, %s1101_s24  ;;  %294 = vrot.lane.b32.xlu1 %v293_v21, %s1102_s29  ;;  %v918_v62 = vld [vmem:[%s1917_s0 + $0x3f] ss:$72 sm:$0x70]   ;;  %v2_v63 = vld [vmem:[%s1917_s0] ss:$72 sm:$0xf]   ;;  %v443_v1 = vsel %vm4_vm0, %v915_v59, %v914_v58 }
  0x34   :  { %v3_v0 = vld [vmem:[%s1917_s0] ss:$72 sm:$0x70]   ;;  %v454_v5 = vsel %vm4_vm0, %v918_v62, %v917_v61  ;;  %v922_v6 = vld [vmem:[%s1917_s0 + $0x1a] ss:$72 sm:$0xf]  }
  0x35   :  { %v5_v2 = vsel %vm4_vm0, %v3_v0, %v2_v63  ;;  %v920_v3 = vld [vmem:[%s1917_s0 + $0x8] ss:$72 sm:$0xf]   ;;  %v923_v7 = vld [vmem:[%s1917_s0 + $0x1a] ss:$72 sm:$0x70]  }
  0x36   :  { %v921_v4 = vld [vmem:[%s1917_s0 + $0x8] ss:$72 sm:$0x70]   ;;  %7 = vst.msk [vmem:[%s1918_s1] sm:$0x7f] %vm6_vm4, %v5_v2   ;;  %s1117_s23 = smov 57   ;;  %v475_v11 = vsel %vm4_vm0, %v923_v7, %v922_v6 }
  0x37   :  { %304 = vrot.lane.b32.xlu0 %v303_v24, %s1103_s5  ;;  %315 = vrot.lane.b32.xlu1 %v314_v27, %s1104_s10  ;;  %v465_v8 = vsel %vm4_vm0, %v921_v4, %v920_v3  ;;  %v925_v9 = vld [vmem:[%s1917_s0 + $0x2c] ss:$72 sm:$0xf]   ;;  %s1118_s28 = smov 56   ;;  %s1119_s4 = smov 54   ;;  %vm167_vm4 = vcmask 917320  }
  0x38   :  { %v926_v10 = vld [vmem:[%s1917_s0 + $0x2c] ss:$72 sm:$0x70]   ;;  %v928_v12 = vld [vmem:[%s1917_s0 + $0x3e] ss:$72 sm:$0xf]  }
  0x39   :  { %v929_v13 = vld [vmem:[%s1917_s0 + $0x3e] ss:$72 sm:$0x70]   ;;  %v486_v14 = vsel %vm4_vm0, %v926_v10, %v925_v9  ;;  %v931_v15 = vld [vmem:[%s1917_s0 + $0x7] ss:$72 sm:$0xf]  }
  0x3a   :  { %v932_v16 = vld [vmem:[%s1917_s0 + $0x7] ss:$72 sm:$0x70]   ;;  %v497_v17 = vsel %vm4_vm0, %v929_v13, %v928_v12  ;;  %s1120_s9 = smov 52   ;;  %s1121_s14 = smov 50  }
  0x3b   :  { %326 = vrot.lane.b32.xlu0 %v325_v30, %s1105_s15  ;;  %337 = vrot.lane.b32.xlu1 %v336_v33, %s1106_s20  ;;  %v933_v18 = vld [vmem:[%s1917_s0 + $0x19] ss:$72 sm:$0xf]   ;;  %v508_v20 = vsel %vm4_vm0, %v932_v16, %v931_v15  ;;  %v936_v21 = vld [vmem:[%s1917_s0 + $0x2b] ss:$72 sm:$0xf]  }
  0x3c   :  { %v934_v19 = vld [vmem:[%s1917_s0 + $0x19] ss:$72 sm:$0x70]   ;;  %v937_v22 = vld [vmem:[%s1917_s0 + $0x2b] ss:$72 sm:$0x70]  }
  0x3d   :  { %v518_v23 = vsel %vm4_vm0, %v934_v19, %v933_v18  ;;  %s1122_s19 = smov 49   ;;  %v939_v24 = vld [vmem:[%s1917_s0 + $0x3d] ss:$72 sm:$0xf]   ;;  %v529_v26 = vsel %vm4_vm0, %v937_v22, %v936_v21  ;;  %s1123_s24 = smov 47  }
  0x3e   :  { %v940_v25 = vld [vmem:[%s1917_s0 + $0x3d] ss:$72 sm:$0x70]   ;;  %v942_v27 = vld [vmem:[%s1917_s0 + $0x6] ss:$72 sm:$0xf]  }
  0x3f   :  { %347 = vrot.lane.b32.xlu0 %v346_v36, %s1107_s25  ;;  %358 = vrot.lane.b32.xlu1 %v357_v39, %s1108_s30  ;;  %v943_v28 = vld [vmem:[%s1917_s0 + $0x6] ss:$72 sm:$0x70]   ;;  %v540_v29 = vsel %vm4_vm0, %v940_v25, %v939_v24  ;;  %s1124_s29 = smov 45   ;;  %s1125_s5 = smov 43  }
  0x40   :  { %v944_v30 = vld [vmem:[%s1917_s0 + $0x18] ss:$72 sm:$0xf]   ;;  %v551_v32 = vsel %vm4_vm0, %v943_v28, %v942_v27  ;;  %v947_v33 = vld [vmem:[%s1917_s0 + $0x2a] ss:$72 sm:$0xf]  }
  0x41   :  { %v945_v31 = vld [vmem:[%s1917_s0 + $0x18] ss:$72 sm:$0x70]   ;;  %v948_v34 = vld [vmem:[%s1917_s0 + $0x2a] ss:$72 sm:$0x70]  }
  0x42   :  { %v561_v35 = vsel %vm4_vm0, %v945_v31, %v944_v30  ;;  %s1126_s10 = smov 42   ;;  %v950_v36 = vld [vmem:[%s1917_s0 + $0x3c] ss:$72 sm:$0xf]   ;;  %v572_v38 = vsel %vm4_vm0, %v948_v34, %v947_v33  ;;  %s1127_s15 = smov 40  }
  0x43   :  { %369 = vrot.lane.b32.xlu0 %v368_v42, %s1109_s6  ;;  %380 = vrot.lane.b32.xlu1 %v379_v45, %s1110_s11  ;;  %s1114_s6 = smov 63   ;;  %s1115_s11 = smov 61   ;;  %v951_v37 = vld [vmem:[%s1917_s0 + $0x3c] ss:$72 sm:$0x70]  }
  0x44   :  { %v953_v39 = vld [vmem:[%s1917_s0 + $0x5] ss:$72 sm:$0xf]   ;;  %v583_v41 = vsel %vm4_vm0, %v951_v37, %v950_v36  ;;  %s1128_s20 = smov 38   ;;  %s1129_s25 = smov 36  }
  0x45   :  { %v954_v40 = vld [vmem:[%s1917_s0 + $0x5] ss:$72 sm:$0x70]   ;;  %v955_v42 = vld [vmem:[%s1917_s0 + $0x17] ss:$72 sm:$0xf]  }
  0x46   :  { %v956_v43 = vld [vmem:[%s1917_s0 + $0x17] ss:$72 sm:$0x70]   ;;  %v594_v44 = vsel %vm4_vm0, %v954_v40, %v953_v39  ;;  %v958_v45 = vld [vmem:[%s1917_s0 + $0x29] ss:$72 sm:$0xf]  }
  0x47   :  { %390 = vrot.lane.b32.xlu0 %v389_v48, %s1111_s16  ;;  %401 = vrot.lane.b32.xlu1 %v400_v51, %s1112_s21  ;;  %v959_v46 = vld [vmem:[%s1917_s0 + $0x29] ss:$72 sm:$0x70]   ;;  %v604_v47 = vsel %vm4_vm0, %v956_v43, %v955_v42  ;;  %s1130_s30 = smov 35   ;;  %s1133_s16 = smov 29  }
  0x48   :  { %v961_v48 = vld [vmem:[%s1917_s0 + $0x3b] ss:$72 sm:$0xf]   ;;  %v615_v50 = vsel %vm4_vm0, %v959_v46, %v958_v45  ;;  %v964_v51 = vld [vmem:[%s1917_s0 + $0x4] ss:$72 sm:$0xf]  }
  0x49   :  { %v962_v49 = vld [vmem:[%s1917_s0 + $0x3b] ss:$72 sm:$0x70]   ;;  %v965_v52 = vld [vmem:[%s1917_s0 + $0x4] ss:$72 sm:$0x70]  }
  0x4a   :  { %v626_v53 = vsel %vm4_vm0, %v962_v49, %v961_v48  ;;  %v967_v55 = vld [vmem:[%s1917_s0 + $0x16] ss:$72 sm:$0x70]   ;;  %v637_v56 = vsel %vm4_vm0, %v965_v52, %v964_v51  ;;  %v970_v58 = vld [vmem:[%s1917_s0 + $0x28] ss:$72 sm:$0x70]  }
  0x4b   :  { %412 = vrot.lane.b32.xlu0 %v411_v54, %s1113_s26  ;;  %423 = vrot.lane.b32.xlu1 %v422_v57, %s1114_s6  ;;  %s1131_s6 = smov 33   ;;  %v966_v54 = vld [vmem:[%s1917_s0 + $0x16] ss:$72 sm:$0xf]   ;;  %s1134_s21 = smov 28  }
  0x4c   :  { %v969_v57 = vld [vmem:[%s1917_s0 + $0x28] ss:$72 sm:$0xf]   ;;  %v647_v59 = vsel %vm4_vm0, %v967_v55, %v966_v54  ;;  %v973_v61 = vld [vmem:[%s1917_s0 + $0x3a] ss:$72 sm:$0x70]  }
  0x4d   :  { %v658_v62 = vsel %vm4_vm0, %v970_v58, %v969_v57  ;;  %s1135_s26 = smov 26   ;;  %v975_v63 = vld [vmem:[%s1917_s0 + $0x3] ss:$72 sm:$0xf]   ;;  %s1136_s2 = smov 24  }
  0x4e   :  { %v976_v0 = vld [vmem:[%s1917_s0 + $0x3] ss:$72 sm:$0x70]   ;;  %v977_v4 = vld [vmem:[%s1917_s0 + $0x15] ss:$72 sm:$0xf]  }
  0x4f   :  { %433 = vrot.lane.b32.xlu0 %v432_v60, %s1115_s11  ;;  %444 = vrot.lane.b32.xlu1 %v443_v1, %s1116_s18  ;;  %s1132_s11 = smov 31   ;;  %v972_v60 = vld [vmem:[%s1917_s0 + $0x3a] ss:$72 sm:$0xf]   ;;  %v680_v6 = vsel %vm4_vm0, %v976_v0, %v975_v63  ;;  %s1138_s18 = smov 21  }
  0x50   :  { %v669_v1 = vsel %vm4_vm0, %v973_v61, %v972_v60  ;;  %v980_v7 = vld [vmem:[%s1917_s0 + $0x27] ss:$72 sm:$0xf]   ;;  %v984_v12 = vld [vmem:[%s1917_s0 + $0x39] ss:$72 sm:$0x70]  }
  0x51   :  { %s1139_s27 = smov 19   ;;  %v986_v15 = vld [vmem:[%s1917_s0 + $0x2] ss:$72 sm:$0xf]   ;;  %s1140_s7 = smov 17  }
  0x52   :  { %v987_v16 = vld [vmem:[%s1917_s0 + $0x2] ss:$72 sm:$0x70]   ;;  %v988_v19 = vld [vmem:[%s1917_s0 + $0x14] ss:$72 sm:$0xf]  }
  0x53   :  { %455 = vrot.lane.b32.xlu0 %v454_v5, %s1117_s23  ;;  %466 = vrot.lane.b32.xlu1 %v465_v8, %s1118_s28  ;;  %v978_v5 = vld [vmem:[%s1917_s0 + $0x15] ss:$72 sm:$0x70]   ;;  %v981_v8 = vld [vmem:[%s1917_s0 + $0x27] ss:$72 sm:$0x70]   ;;  %v723_v21 = vsel %vm4_vm0, %v987_v16, %v986_v15 }
  0x54   :  { %v690_v9 = vsel %vm4_vm0, %v978_v5, %v977_v4  ;;  %v701_v13 = vsel %vm4_vm0, %v981_v8, %v980_v7  ;;  %v992_v24 = vld [vmem:[%s1917_s0 + $0x26] ss:$72 sm:$0x70]   ;;  %v994_v27 = vld [vmem:[%s1917_s0 + $0x38] ss:$72 sm:$0xf]  }
  0x55   :  { %v995_v28 = vld [vmem:[%s1917_s0 + $0x38] ss:$72 sm:$0x70]   ;;  %s1143_s28 = smov 12   ;;  %s1145_s13 = smov 8  }
  0x56   :  { %v997_v31 = vld [vmem:[%s1917_s0 + $0x1] ss:$72 sm:$0xf]   ;;  %v755_v33 = vsel %vm4_vm0, %v995_v28, %v994_v27  ;;  %v1000_v36 = vld [vmem:[%s1917_s0 + $0x13] ss:$72 sm:$0x70]  }
  0x57   :  { %476 = vrot.lane.b32.xlu0 %v475_v11, %s1119_s4  ;;  %487 = vrot.lane.b32.xlu1 %v486_v14, %s1120_s9  ;;  %v983_v11 = vld [vmem:[%s1917_s0 + $0x39] ss:$72 sm:$0xf]   ;;  %v1002_v39 = vld [vmem:[%s1917_s0 + $0x25] ss:$72 sm:$0xf]  }
  0x58   :  { %v1003_v40 = vld [vmem:[%s1917_s0 + $0x25] ss:$72 sm:$0x70]   ;;  %v1005_v43 = vld [vmem:[%s1917_s0 + $0x37] ss:$72 sm:$0xf]  }
  0x59   :  { %v787_v45 = vsel %vm4_vm0, %v1003_v40, %v1002_v39  ;;  %s1149_s3 = smov 1  }
  0x5b   :  { %498 = vrot.lane.b32.xlu0 %v497_v17, %s1121_s14  ;;  %509 = vrot.lane.b32.xlu1 %v508_v20, %s1122_s19  ;;  %v712_v17 = vsel %vm4_vm0, %v984_v12, %v983_v11  ;;  %v989_v20 = vld [vmem:[%s1917_s0 + $0x14] ss:$72 sm:$0x70]   ;;  %s1141_s14 = smov 15  }
  0x5c   :  { %v733_v25 = vsel %vm4_vm0, %v989_v20, %v988_v19 }
  0x5f   :  { %519 = vrot.lane.b32.xlu0 %v518_v23, %s1123_s24  ;;  %530 = vrot.lane.b32.xlu1 %v529_v26, %s1124_s29  ;;  %v991_v23 = vld [vmem:[%s1917_s0 + $0x26] ss:$72 sm:$0xf]   ;;  %s1148_s29 = smov 3  }
  0x63   :  { %541 = vrot.lane.b32.xlu0 %v540_v29, %s1125_s5  ;;  %552 = vrot.lane.b32.xlu1 %v551_v32, %s1126_s10  ;;  %v744_v29 = vsel %vm4_vm0, %v992_v24, %v991_v23  ;;  %v998_v32 = vld [vmem:[%s1917_s0 + $0x1] ss:$72 sm:$0x70]  }
  0x64   :  { %v766_v37 = vsel %vm4_vm0, %v998_v32, %v997_v31 }
  0x67   :  { %562 = vrot.lane.b32.xlu0 %v561_v35, %s1127_s15  ;;  %573 = vrot.lane.b32.xlu1 %v572_v38, %s1128_s20  ;;  %v999_v35 = vld [vmem:[%s1917_s0 + $0x13] ss:$72 sm:$0xf]   ;;  %s1146_s20 = smov 7  }
  0x6b   :  { %584 = vrot.lane.b32.xlu0 %v583_v41, %s1129_s25  ;;  %595 = vrot.lane.b32.xlu1 %v594_v44, %s1130_s30  ;;  %v776_v41 = vsel %vm4_vm0, %v1000_v36, %v999_v35  ;;  %v1006_v44 = vld [vmem:[%s1917_s0 + $0x37] ss:$72 sm:$0x70]  }
  0x6f   :  { %605 = vrot.lane.b32.xlu0 %v604_v47, %s1131_s6  ;;  %616 = vrot.lane.b32.xlu1 %v615_v50, %s1132_s11  ;;  %s1137_s11 = smov 22   ;;  %s1144_s6 = smov 10   ;;  %v798_v47 = vsel %vm4_vm0, %v1006_v44, %v1005_v43  ;;  %vm188_vm0 = vcmask 884520  }
  0x73   :  { %627 = vrot.lane.b32.xlu0 %v626_v53, %s1133_s16  ;;  %638 = vrot.lane.b32.xlu1 %v637_v56, %s1134_s21  ;;  %s1142_s21 = smov 14  }
  0x76   :  { %v80_v3 = vpop.permute.xlu1 %79  }
  0x77   :  { %648 = vrot.lane.b32.xlu0 %v647_v59, %s1135_s26  ;;  %659 = vrot.lane.b32.xlu1 %v658_v62, %s1136_s2  ;;  %s1147_s26 = smov 5  }
  0x79   :  { %v23_v2 = vpop.permute.xlu0 %22  }
  0x7a   :  { %808 = vst.msk [vmem:[%s1918_s1 + $0x8] sm:$0x7f] %vm24_vm5, %v23_v2   ;;  %vm177_vm5 = vcmask 900920  }
  0x7b   :  { %28 = vst.msk [vmem:[%s1918_s1] sm:$0x7f] %vm27_vm6, %v23_v2   ;;  %670 = vrot.lane.b32.xlu0 %v669_v1, %s1137_s11  ;;  %681 = vrot.lane.b32.xlu1 %v680_v6, %s1138_s18  ;;  %vm199_vm6 = vcmask 868120  }
  0x7c   :  { %82 = vst.msk [vmem:[%s1918_s1] sm:$0x7f] %vm81_vm7, %v80_v3   ;;  %vm210_vm7 = vcmask 859920  }
  0x7d   :  { %v44_v10 = vpop.permute.xlu0 %43   ;;  %v66_v14 = vpop.permute.xlu1 %65  }
  0x7e   :  { %813 = vst.msk [vmem:[%s1918_s1 + $0x10] sm:$0x7f] %vm45_vm8, %v44_v10   ;;  %vm220_vm8 = vcmask 843520  }
  0x7f   :  { %814 = vst.msk [vmem:[%s1918_s1 + $0x8] sm:$0x7f] %vm48_vm9, %v44_v10   ;;  %691 = vrot.lane.b32.xlu0 %v690_v9, %s1139_s27  ;;  %702 = vrot.lane.b32.xlu1 %v701_v13, %s1140_s7  ;;  %vm231_vm9 = vcmask 827120  }
  0x80   :  { %819 = vst.msk [vmem:[%s1918_s1 + $0x18] sm:$0x7f] %vm67_vm10, %v66_v14   ;;  %vm242_vm10 = vcmask 810720  }
  0x81   :  { %820 = vst.msk [vmem:[%s1918_s1 + $0x10] sm:$0x7f] %vm70_vm11, %v66_v14   ;;  %v90_v18 = vpop.permute.xlu0 %89   ;;  %v101_v22 = vpop.permute.xlu1 %100   ;;  %vm253_vm11 = vcmask 802520  }
  0x82   :  { %825 = vst.msk [vmem:[%s1918_s1 + $0x8] sm:$0x7f] %vm91_vm12, %v90_v18   ;;  %vm263_vm12 = vcmask 786120  }
  0x83   :  { %713 = vrot.lane.b32.xlu0 %v712_v17, %s1141_s14  ;;  %828 = vst.msk [vmem:[%s1918_s1 + $0x10] sm:$0x7f] %vm102_vm13, %v101_v22   ;;  %724 = vrot.lane.b32.xlu1 %v723_v21, %s1142_s21  ;;  %vm274_vm13 = vcmask 769720  }
  0x85   :  { %v112_v26 = vpop.permute.xlu0 %111   ;;  %v123_v30 = vpop.permute.xlu1 %122  }
  0x86   :  { %831 = vst.msk [vmem:[%s1918_s1 + $0x18] sm:$0x7f] %vm113_vm14, %v112_v26   ;;  %vm285_vm14 = vcmask 753320  }
  0x87   :  { %734 = vrot.lane.b32.xlu0 %v733_v25, %s1143_s28  ;;  %125 = vst.msk [vmem:[%s1918_s1] sm:$0x7f] %vm124_vm15, %v123_v30   ;;  %745 = vrot.lane.b32.xlu1 %v744_v29, %s1144_s6  ;;  %vm296_vm15 = vcmask 745120  }
  0x89   :  { %v133_v34 = vpop.permute.xlu0 %132   ;;  %v144_v38 = vpop.permute.xlu1 %143  }
  0x8a   :  { %836 = vst.msk [vmem:[%s1918_s1 + $0x8] sm:$0x7f] %vm134_vm1, %v133_v34   ;;  %vm306_vm1 = vcmask 728720  }
  0x8b   :  { %756 = vrot.lane.b32.xlu0 %v755_v33, %s1145_s13  ;;  %839 = vst.msk [vmem:[%s1918_s1 + $0x10] sm:$0x7f] %vm145_vm2, %v144_v38   ;;  %767 = vrot.lane.b32.xlu1 %v766_v37, %s1146_s20  ;;  %vm317_vm2 = vcmask 712320  }
  0x8d   :  { %v155_v42 = vpop.permute.xlu0 %154   ;;  %v166_v46 = vpop.permute.xlu1 %165  }
  0x8e   :  { %842 = vst.msk [vmem:[%s1918_s1 + $0x18] sm:$0x7f] %vm156_vm3, %v155_v42   ;;  %vm328_vm3 = vcmask 695920  }
  0x8f   :  { %777 = vrot.lane.b32.xlu0 %v776_v41, %s1147_s26  ;;  %168 = vst.msk [vmem:[%s1918_s1] sm:$0x7f] %vm167_vm4, %v166_v46   ;;  %788 = vrot.lane.b32.xlu1 %v787_v45, %s1148_s29  ;;  %vm339_vm4 = vcmask 687720  }
  0x91   :  { %v176_v48 = vpop.permute.xlu0 %175   ;;  %v187_v49 = vpop.permute.xlu1 %186  }
  0x92   :  { %847 = vst.msk [vmem:[%s1918_s1 + $0x8] sm:$0x7f] %vm177_vm5, %v176_v48   ;;  %vm349_vm5 = vcmask 671320  }
  0x93   :  { %799 = vrot.lane.b32.xlu0 %v798_v47, %s1149_s3  ;;  %850 = vst.msk [vmem:[%s1918_s1 + $0x10] sm:$0x7f] %vm188_vm0, %v187_v49   ;;  %vm360_vm0 = vcmask 654920  }
  0x95   :  { %v198_v50 = vpop.permute.xlu0 %197   ;;  %v209_v51 = vpop.permute.xlu1 %208  }
  0x96   :  { %853 = vst.msk [vmem:[%s1918_s1 + $0x18] sm:$0x7f] %vm199_vm6, %v198_v50   ;;  %vm371_vm6 = vcmask 638520  }
  0x97   :  { %211 = vst.msk [vmem:[%s1918_s1] sm:$0x7f] %vm210_vm7, %v209_v51   ;;  %vm382_vm7 = vcmask 630320  }
  0x99   :  { %v219_v52 = vpop.permute.xlu0 %218   ;;  %v230_v53 = vpop.permute.xlu1 %229  }
  0x9a   :  { %858 = vst.msk [vmem:[%s1918_s1 + $0x8] sm:$0x7f] %vm220_vm8, %v219_v52   ;;  %vm392_vm8 = vcmask 613920  }
  0x9b   :  { %861 = vst.msk [vmem:[%s1918_s1 + $0x10] sm:$0x7f] %vm231_vm9, %v230_v53   ;;  %vm403_vm9 = vcmask 597520  }
  0x9d   :  { %v241_v54 = vpop.permute.xlu0 %240   ;;  %v252_v55 = vpop.permute.xlu1 %251  }
  0x9e   :  { %864 = vst.msk [vmem:[%s1918_s1 + $0x18] sm:$0x7f] %vm242_vm10, %v241_v54   ;;  %vm414_vm10 = vcmask 581120  }
  0x9f   :  { %254 = vst.msk [vmem:[%s1918_s1] sm:$0x7f] %vm253_vm11, %v252_v55   ;;  %vm425_vm11 = vcmask 572920  }
  0xa1   :  { %v262_v56 = vpop.permute.xlu0 %261   ;;  %v273_v57 = vpop.permute.xlu1 %272  }
  0xa2   :  { %869 = vst.msk [vmem:[%s1918_s1 + $0x8] sm:$0x7f] %vm263_vm12, %v262_v56   ;;  %vm435_vm12 = vcmask 556520  }
  0xa3   :  { %872 = vst.msk [vmem:[%s1918_s1 + $0x10] sm:$0x7f] %vm274_vm13, %v273_v57   ;;  %vm446_vm13 = vcmask 540120  }
  0xa5   :  { %v284_v58 = vpop.permute.xlu0 %283   ;;  %v295_v59 = vpop.permute.xlu1 %294  }
  0xa6   :  { %875 = vst.msk [vmem:[%s1918_s1 + $0x18] sm:$0x7f] %vm285_vm14, %v284_v58   ;;  %vm457_vm14 = vcmask 523720  }
  0xa7   :  { %297 = vst.msk [vmem:[%s1918_s1] sm:$0x7f] %vm296_vm15, %v295_v59   ;;  %vm468_vm15 = vcmask 515520  }
  0xa9   :  { %v305_v60 = vpop.permute.xlu0 %304   ;;  %v316_v61 = vpop.permute.xlu1 %315  }
  0xaa   :  { %880 = vst.msk [vmem:[%s1918_s1 + $0x8] sm:$0x7f] %vm306_vm1, %v305_v60   ;;  %vm478_vm1 = vcmask 499120  }
  0xab   :  { %883 = vst.msk [vmem:[%s1918_s1 + $0x10] sm:$0x7f] %vm317_vm2, %v316_v61   ;;  %vm489_vm2 = vcmask 482720  }
  0xad   :  { %v327_v62 = vpop.permute.xlu0 %326   ;;  %v338_v63 = vpop.permute.xlu1 %337  }
  0xae   :  { %886 = vst.msk [vmem:[%s1918_s1 + $0x18] sm:$0x7f] %vm328_vm3, %v327_v62   ;;  %vm500_vm3 = vcmask 466320  }
  0xaf   :  { %340 = vst.msk [vmem:[%s1918_s1] sm:$0x7f] %vm339_vm4, %v338_v63   ;;  %vm511_vm4 = vcmask 458120  }
  0xb1   :  { %v348_v0 = vpop.permute.xlu0 %347   ;;  %v359_v1 = vpop.permute.xlu1 %358  }
  0xb2   :  { %891 = vst.msk [vmem:[%s1918_s1 + $0x8] sm:$0x7f] %vm349_vm5, %v348_v0   ;;  %vm521_vm5 = vcmask 441720  }
  0xb3   :  { %894 = vst.msk [vmem:[%s1918_s1 + $0x10] sm:$0x7f] %vm360_vm0, %v359_v1   ;;  %vm532_vm0 = vcmask 425320  }
  0xb5   :  { %v370_v2 = vpop.permute.xlu0 %369   ;;  %v381_v3 = vpop.permute.xlu1 %380  }
  0xb6   :  { %897 = vst.msk [vmem:[%s1918_s1 + $0x18] sm:$0x7f] %vm371_vm6, %v370_v2   ;;  %vm543_vm6 = vcmask 408920  }
  0xb7   :  { %383 = vst.msk [vmem:[%s1918_s1] sm:$0x7f] %vm382_vm7, %v381_v3   ;;  %vm554_vm7 = vcmask 400720  }
  0xb9   :  { %v391_v4 = vpop.permute.xlu0 %390   ;;  %v402_v5 = vpop.permute.xlu1 %401  }
  0xba   :  { %902 = vst.msk [vmem:[%s1918_s1 + $0x8] sm:$0x7f] %vm392_vm8, %v391_v4   ;;  %vm564_vm8 = vcmask 384320  }
  0xbb   :  { %905 = vst.msk [vmem:[%s1918_s1 + $0x10] sm:$0x7f] %vm403_vm9, %v402_v5   ;;  %vm575_vm9 = vcmask 367920  }
  0xbd   :  { %v413_v6 = vpop.permute.xlu0 %412   ;;  %v424_v7 = vpop.permute.xlu1 %423  }
  0xbe   :  { %908 = vst.msk [vmem:[%s1918_s1 + $0x18] sm:$0x7f] %vm414_vm10, %v413_v6   ;;  %vm586_vm10 = vcmask 351520  }
  0xbf   :  { %426 = vst.msk [vmem:[%s1918_s1] sm:$0x7f] %vm425_vm11, %v424_v7   ;;  %vm597_vm11 = vcmask 343320  }
  0xc1   :  { %v434_v8 = vpop.permute.xlu0 %433   ;;  %v445_v9 = vpop.permute.xlu1 %444  }
  0xc2   :  { %913 = vst.msk [vmem:[%s1918_s1 + $0x8] sm:$0x7f] %vm435_vm12, %v434_v8   ;;  %vm607_vm12 = vcmask 326920  }
  0xc3   :  { %916 = vst.msk [vmem:[%s1918_s1 + $0x10] sm:$0x7f] %vm446_vm13, %v445_v9   ;;  %vm618_vm13 = vcmask 310520  }
  0xc5   :  { %v456_v10 = vpop.permute.xlu0 %455   ;;  %v467_v11 = vpop.permute.xlu1 %466  }
  0xc6   :  { %919 = vst.msk [vmem:[%s1918_s1 + $0x18] sm:$0x7f] %vm457_vm14, %v456_v10   ;;  %vm629_vm14 = vcmask 294120  }
  0xc7   :  { %469 = vst.msk [vmem:[%s1918_s1] sm:$0x7f] %vm468_vm15, %v467_v11   ;;  %vm640_vm15 = vcmask 285920  }
  0xc9   :  { %v477_v12 = vpop.permute.xlu0 %476   ;;  %v488_v13 = vpop.permute.xlu1 %487  }
  0xca   :  { %924 = vst.msk [vmem:[%s1918_s1 + $0x8] sm:$0x7f] %vm478_vm1, %v477_v12   ;;  %vm650_vm1 = vcmask 269520  }
  0xcb   :  { %927 = vst.msk [vmem:[%s1918_s1 + $0x10] sm:$0x7f] %vm489_vm2, %v488_v13   ;;  %vm661_vm2 = vcmask 253120  }
  0xcd   :  { %v499_v14 = vpop.permute.xlu0 %498   ;;  %v510_v15 = vpop.permute.xlu1 %509  }
  0xce   :  { %930 = vst.msk [vmem:[%s1918_s1 + $0x18] sm:$0x7f] %vm500_vm3, %v499_v14   ;;  %vm672_vm3 = vcmask 236720  }
  0xcf   :  { %512 = vst.msk [vmem:[%s1918_s1] sm:$0x7f] %vm511_vm4, %v510_v15   ;;  %vm683_vm4 = vcmask 228520  }
  0xd1   :  { %v520_v16 = vpop.permute.xlu0 %519   ;;  %v531_v17 = vpop.permute.xlu1 %530  }
  0xd2   :  { %935 = vst.msk [vmem:[%s1918_s1 + $0x8] sm:$0x7f] %vm521_vm5, %v520_v16   ;;  %vm693_vm5 = vcmask 212120  }
  0xd3   :  { %938 = vst.msk [vmem:[%s1918_s1 + $0x10] sm:$0x7f] %vm532_vm0, %v531_v17   ;;  %vm704_vm0 = vcmask 195720  }
  0xd5   :  { %v542_v18 = vpop.permute.xlu0 %541   ;;  %v553_v19 = vpop.permute.xlu1 %552  }
  0xd6   :  { %941 = vst.msk [vmem:[%s1918_s1 + $0x18] sm:$0x7f] %vm543_vm6, %v542_v18   ;;  %vm715_vm6 = vcmask 179320  }
  0xd7   :  { %555 = vst.msk [vmem:[%s1918_s1] sm:$0x7f] %vm554_vm7, %v553_v19   ;;  %vm726_vm7 = vcmask 171120  }
  0xd9   :  { %v563_v20 = vpop.permute.xlu0 %562   ;;  %v574_v21 = vpop.permute.xlu1 %573  }
  0xda   :  { %946 = vst.msk [vmem:[%s1918_s1 + $0x8] sm:$0x7f] %vm564_vm8, %v563_v20   ;;  %vm736_vm8 = vcmask 154720  }
  0xdb   :  { %949 = vst.msk [vmem:[%s1918_s1 + $0x10] sm:$0x7f] %vm575_vm9, %v574_v21   ;;  %vm747_vm9 = vcmask 138320  }
  0xdd   :  { %v585_v22 = vpop.permute.xlu0 %584   ;;  %v596_v23 = vpop.permute.xlu1 %595  }
  0xde   :  { %952 = vst.msk [vmem:[%s1918_s1 + $0x18] sm:$0x7f] %vm586_vm10, %v585_v22   ;;  %vm758_vm10 = vcmask 121920  }
  0xdf   :  { %598 = vst.msk [vmem:[%s1918_s1] sm:$0x7f] %vm597_vm11, %v596_v23   ;;  %vm769_vm11 = vcmask 113720  }
  0xe1   :  { %v606_v24 = vpop.permute.xlu0 %605   ;;  %v617_v25 = vpop.permute.xlu1 %616  }
  0xe2   :  { %957 = vst.msk [vmem:[%s1918_s1 + $0x8] sm:$0x7f] %vm607_vm12, %v606_v24   ;;  %vm779_vm12 = vcmask 97320  }
  0xe3   :  { %960 = vst.msk [vmem:[%s1918_s1 + $0x10] sm:$0x7f] %vm618_vm13, %v617_v25   ;;  %vm790_vm13 = vcmask 80920  }
  0xe5   :  { %v628_v26 = vpop.permute.xlu0 %627   ;;  %v639_v27 = vpop.permute.xlu1 %638  }
  0xe6   :  { %963 = vst.msk [vmem:[%s1918_s1 + $0x18] sm:$0x7f] %vm629_vm14, %v628_v26   ;;  %vm801_vm14 = vcmask 64520  }
  0xe7   :  { %641 = vst.msk [vmem:[%s1918_s1] sm:$0x7f] %vm640_vm15, %v639_v27  }
  0xe9   :  { %v649_v28 = vpop.permute.xlu0 %648   ;;  %v660_v29 = vpop.permute.xlu1 %659  }
  0xea   :  { %968 = vst.msk [vmem:[%s1918_s1 + $0x8] sm:$0x7f] %vm650_vm1, %v649_v28  }
  0xeb   :  { %971 = vst.msk [vmem:[%s1918_s1 + $0x10] sm:$0x7f] %vm661_vm2, %v660_v29  }
  0xed   :  { %v671_v30 = vpop.permute.xlu0 %670   ;;  %v682_v31 = vpop.permute.xlu1 %681  }
  0xee   :  { %974 = vst.msk [vmem:[%s1918_s1 + $0x18] sm:$0x7f] %vm672_vm3, %v671_v30  }
  0xef   :  { %684 = vst.msk [vmem:[%s1918_s1] sm:$0x7f] %vm683_vm4, %v682_v31  }
  0xf1   :  { %v692_v32 = vpop.permute.xlu0 %691   ;;  %v703_v33 = vpop.permute.xlu1 %702  }
  0xf2   :  { %979 = vst.msk [vmem:[%s1918_s1 + $0x8] sm:$0x7f] %vm693_vm5, %v692_v32  }
  0xf3   :  { %982 = vst.msk [vmem:[%s1918_s1 + $0x10] sm:$0x7f] %vm704_vm0, %v703_v33  }
  0xf5   :  { %v714_v34 = vpop.permute.xlu0 %713   ;;  %v725_v35 = vpop.permute.xlu1 %724  }
  0xf6   :  { %985 = vst.msk [vmem:[%s1918_s1 + $0x18] sm:$0x7f] %vm715_vm6, %v714_v34  }
  0xf7   :  { %727 = vst.msk [vmem:[%s1918_s1] sm:$0x7f] %vm726_vm7, %v725_v35  }
  0xf9   :  { %v735_v36 = vpop.permute.xlu0 %734   ;;  %v746_v37 = vpop.permute.xlu1 %745  }
  0xfa   :  { %990 = vst.msk [vmem:[%s1918_s1 + $0x8] sm:$0x7f] %vm736_vm8, %v735_v36  }
  0xfb   :  { %993 = vst.msk [vmem:[%s1918_s1 + $0x10] sm:$0x7f] %vm747_vm9, %v746_v37  }
  0xfd   :  { %v757_v38 = vpop.permute.xlu0 %756   ;;  %v768_v39 = vpop.permute.xlu1 %767  }
  0xfe   :  { %996 = vst.msk [vmem:[%s1918_s1 + $0x18] sm:$0x7f] %vm758_vm10, %v757_v38  }
  0xff   :  { %770 = vst.msk [vmem:[%s1918_s1] sm:$0x7f] %vm769_vm11, %v768_v39  }
 0x101   :  { %v778_v40 = vpop.permute.xlu0 %777   ;;  %v789_v41 = vpop.permute.xlu1 %788  }
 0x102   :  { %1001 = vst.msk [vmem:[%s1918_s1 + $0x8] sm:$0x7f] %vm779_vm12, %v778_v40  }
 0x103   :  { %1004 = vst.msk [vmem:[%s1918_s1 + $0x10] sm:$0x7f] %vm790_vm13, %v789_v41  }
 0x105   :  { %v800_v42 = vpop.permute.xlu0 %799  }
 0x106   :  { %1007 = vst.msk [vmem:[%s1918_s1 + $0x18] sm:$0x7f] %vm801_vm14, %v800_v42  }

// kernel: tile.19
= control target key start
LH: loop header
LB: loop body
LE: loop exit
PB: predicated region body
PF: predicated region fallthrough
CT: control target
= control target key end

     0   :  { %vm6_vm0 = vcmask 1043458   ;;  %vm10_vm1 = vcmask 1045508   ;;  %vm14_vm2 = vcmask 1046534   ;;  %s19_s6 = smov 3  ;;  %s22_s7 = smov 12  ;;  %vm16_vm3 = vcmask 56320   ;;  %s722_s0 = inlined_call_operand.vmem [shape: f32[7,16,7], index: 0, kind: input, shape index: {}]   ;;  %s723_s1 = inlined_call_operand.vmem [shape: f32[7,112], index: 1, kind: output, shape index: {}]  }
   0x1   :  { %v334_v0 = vld [vmem:[%s722_s0 + $0xf] ss:$16 sm:%s19_s6]   ;;  %s27_s12 = smov 48  ;;  %s61_s17 = smov 3  ;;  %v345_v11 = vld [vmem:[%s722_s0 + $0x67] sm:$0x40]  }
   0x2   :  { %v335_v1 = vld [vmem:[%s722_s0 + $0xf] ss:$16 sm:%s22_s7]   ;;  %s64_s18 = smov 12  ;;  %v342_v6 = vld [vmem:[%s722_s0 + $0xd] ss:$16 sm:%s61_s17]   ;;  %s69_s23 = smov 48 }
   0x3   :  { %v25_v2 = vsel %vm6_vm0, %v335_v1, %v334_v0  ;;  %v336_v3 = vld [vmem:[%s722_s0 + $0xf] ss:$16 sm:%s27_s12]   ;;  %v343_v7 = vld [vmem:[%s722_s0 + $0xd] ss:$16 sm:%s64_s18]   ;;  %s40_s28 = smov 3  ;;  %s43_s29 = smov 12 }
   0x4   :  { %v337_v4 = vld [vmem:[%s722_s0 + $0x69] sm:$0x40]   ;;  %v30_v5 = vsel %vm10_vm1, %v336_v3, %v25_v2  ;;  %v67_v9 = vsel %vm6_vm0, %v343_v7, %v342_v6  ;;  %v344_v10 = vld [vmem:[%s722_s0 + $0xd] ss:$16 sm:%s69_s23]   ;;  %s409_s30 = smov 105   ;;  %s48_s4 = smov 48 }
   0x5   :  { %v34_v8 = vsel %vm14_vm2, %v337_v4, %v30_v5  ;;  %v72_v12 = vsel %vm10_vm1, %v344_v10, %v67_v9  ;;  %v338_v13 = vld [vmem:[%s722_s0 + $0xe] ss:$16 sm:%s40_s28]   ;;  %s82_s11 = smov 3  ;;  %s85_s12 = smov 12  ;;  %v349_v20 = vld [vmem:[%s722_s0 + $0x66] sm:$0x40]  }
   0x6   :  { %35 = vrot.lane.b32.xlu0 %v34_v8, %s409_s30  ;;  %v341_v14 = vld [vmem:[%s722_s0 + $0x68] sm:$0x40]   ;;  %v76_v15 = vsel %vm14_vm2, %v345_v11, %v72_v12  ;;  %s410_s13 = smov 91   ;;  %v346_v19 = vld [vmem:[%s722_s0 + $0xc] ss:$16 sm:%s82_s11]   ;;  %s90_s16 = smov 48 }
   0x7   :  { %v339_v16 = vld [vmem:[%s722_s0 + $0xe] ss:$16 sm:%s43_s29]   ;;  %77 = vrot.lane.b32.xlu1 %v76_v15, %s410_s13  ;;  %s103_s23 = smov 3  ;;  %s106_s24 = smov 12  ;;  %v353_v31 = vld [vmem:[%s722_s0 + $0x65] sm:$0x40]  }
   0x8   :  { %v340_v17 = vld [vmem:[%s722_s0 + $0xe] ss:$16 sm:%s48_s4]   ;;  %v46_v18 = vsel %vm6_vm0, %v339_v16, %v338_v13  ;;  %v347_v22 = vld [vmem:[%s722_s0 + $0xc] ss:$16 sm:%s85_s12]   ;;  %s111_s29 = smov 48  ;;  %s411_s30 = smov 98  }
   0x9   :  { %v51_v21 = vsel %vm10_vm1, %v340_v17, %v46_v18  ;;  %v348_v23 = vld [vmem:[%s722_s0 + $0xc] ss:$16 sm:%s90_s16]   ;;  %v88_v25 = vsel %vm6_vm0, %v347_v22, %v346_v19  ;;  %v350_v26 = vld [vmem:[%s722_s0 + $0xb] ss:$16 sm:%s103_s23]   ;;  %s124_s6 = smov 3  ;;  %s127_s7 = smov 12 }
   0xa   :  { %v55_v24 = vsel %vm14_vm2, %v341_v14, %v51_v21  ;;  %v351_v27 = vld [vmem:[%s722_s0 + $0xb] ss:$16 sm:%s106_s24]   ;;  %v93_v28 = vsel %vm10_vm1, %v348_v23, %v88_v25  ;;  %v354_v34 = vld [vmem:[%s722_s0 + $0xa] ss:$16 sm:%s124_s6]   ;;  %s132_s12 = smov 48  ;;  %s412_s13 = smov 84  }
   0xb   :  { %56 = vrot.lane.b32.xlu0 %v55_v24, %s411_s30  ;;  %v109_v29 = vsel %vm6_vm0, %v351_v27, %v350_v26  ;;  %v352_v30 = vld [vmem:[%s722_s0 + $0xb] ss:$16 sm:%s111_s29]   ;;  %v97_v32 = vsel %vm14_vm2, %v349_v20, %v93_v28  ;;  %v357_v39 = vld [vmem:[%s722_s0 + $0x64] sm:$0x40]   ;;  %s145_s18 = smov 3  ;;  %s148_s19 = smov 12 }
   0xc   :  { %v114_v33 = vsel %vm10_vm1, %v352_v30, %v109_v29  ;;  %v355_v35 = vld [vmem:[%s722_s0 + $0xa] ss:$16 sm:%s127_s7]   ;;  %98 = vrot.lane.b32.xlu1 %v97_v32, %s412_s13  ;;  %s153_s24 = smov 48  ;;  %s413_s25 = smov 77   ;;  %v361_v46 = vld [vmem:[%s722_s0 + $0x63] sm:$0x40]  }
   0xd   :  { %v118_v36 = vsel %vm14_vm2, %v353_v31, %v114_v33  ;;  %v130_v37 = vsel %vm6_vm0, %v355_v35, %v354_v34  ;;  %v356_v38 = vld [vmem:[%s722_s0 + $0xa] ss:$16 sm:%s132_s12]   ;;  %v358_v41 = vld [vmem:[%s722_s0 + $0x9] ss:$16 sm:%s145_s18]   ;;  %s166_s30 = smov 3  ;;  %s169_s2 = smov 12 }
   0xe   :  { %v135_v40 = vsel %vm10_vm1, %v356_v38, %v130_v37  ;;  %v359_v42 = vld [vmem:[%s722_s0 + $0x9] ss:$16 sm:%s148_s19]   ;;  %v362_v48 = vld [vmem:[%s722_s0 + $0x8] ss:$16 sm:%s166_s30]   ;;  %s174_s7 = smov 48  ;;  %s414_s8 = smov 70  }
   0xf   :  { %119 = vrot.lane.b32.xlu0 %v118_v36, %s413_s25  ;;  %v139_v43 = vsel %vm14_vm2, %v357_v39, %v135_v40  ;;  %v151_v44 = vsel %vm6_vm0, %v359_v42, %v358_v41  ;;  %v360_v45 = vld [vmem:[%s722_s0 + $0x9] ss:$16 sm:%s153_s24]   ;;  %v365_v53 = vld [vmem:[%s722_s0 + $0x62] sm:$0x40]   ;;  %s187_s13 = smov 3  ;;  %s190_s14 = smov 12 }
  0x10   :  { %v156_v47 = vsel %vm10_vm1, %v360_v45, %v151_v44  ;;  %v363_v49 = vld [vmem:[%s722_s0 + $0x8] ss:$16 sm:%s169_s2]   ;;  %140 = vrot.lane.b32.xlu1 %v139_v43, %s414_s8  ;;  %s195_s19 = smov 48  ;;  %s415_s20 = smov 63   ;;  %v369_v60 = vld [vmem:[%s722_s0 + $0x61] sm:$0x40]  }
  0x11   :  { %v160_v50 = vsel %vm14_vm2, %v361_v46, %v156_v47  ;;  %v172_v51 = vsel %vm6_vm0, %v363_v49, %v362_v48  ;;  %v364_v52 = vld [vmem:[%s722_s0 + $0x8] ss:$16 sm:%s174_s7]   ;;  %v366_v55 = vld [vmem:[%s722_s0 + $0x7] ss:$16 sm:%s187_s13]   ;;  %s208_s25 = smov 3  ;;  %s211_s26 = smov 12 }
  0x12   :  { %v177_v54 = vsel %vm10_vm1, %v364_v52, %v172_v51  ;;  %v367_v56 = vld [vmem:[%s722_s0 + $0x7] ss:$16 sm:%s190_s14]   ;;  %v370_v62 = vld [vmem:[%s722_s0 + $0x6] ss:$16 sm:%s208_s25]   ;;  %s216_s2 = smov 48  ;;  %s416_s3 = smov 56  }
  0x13   :  { %161 = vrot.lane.b32.xlu0 %v160_v50, %s415_s20  ;;  %v181_v57 = vsel %vm14_vm2, %v365_v53, %v177_v54  ;;  %v193_v58 = vsel %vm6_vm0, %v367_v56, %v366_v55  ;;  %v368_v59 = vld [vmem:[%s722_s0 + $0x7] ss:$16 sm:%s195_s19]   ;;  %v373_v3 = vld [vmem:[%s722_s0 + $0x60] sm:$0x40]   ;;  %s229_s8 = smov 3  ;;  %s232_s9 = smov 12 }
  0x14   :  { %v198_v61 = vsel %vm10_vm1, %v368_v59, %v193_v58  ;;  %v371_v63 = vld [vmem:[%s722_s0 + $0x6] ss:$16 sm:%s211_s26]   ;;  %182 = vrot.lane.b32.xlu1 %v181_v57, %s416_s3  ;;  %s237_s14 = smov 48  ;;  %s417_s15 = smov 49   ;;  %v377_v10 = vld [vmem:[%s722_s0 + $0x5f] sm:$0x40]  }
  0x15   :  { %v202_v0 = vsel %vm14_vm2, %v369_v60, %v198_v61  ;;  %v214_v1 = vsel %vm6_vm0, %v371_v63, %v370_v62  ;;  %v372_v2 = vld [vmem:[%s722_s0 + $0x6] ss:$16 sm:%s216_s2]   ;;  %v374_v5 = vld [vmem:[%s722_s0 + $0x5] ss:$16 sm:%s229_s8]   ;;  %s250_s20 = smov 3  ;;  %s253_s21 = smov 12 }
  0x16   :  { %v219_v4 = vsel %vm10_vm1, %v372_v2, %v214_v1  ;;  %v375_v6 = vld [vmem:[%s722_s0 + $0x5] ss:$16 sm:%s232_s9]   ;;  %v378_v12 = vld [vmem:[%s722_s0 + $0x4] ss:$16 sm:%s250_s20]   ;;  %s258_s26 = smov 48  ;;  %s418_s27 = smov 42  }
  0x17   :  { %203 = vrot.lane.b32.xlu0 %v202_v0, %s417_s15  ;;  %v223_v7 = vsel %vm14_vm2, %v373_v3, %v219_v4  ;;  %v235_v8 = vsel %vm6_vm0, %v375_v6, %v374_v5  ;;  %v376_v9 = vld [vmem:[%s722_s0 + $0x5] ss:$16 sm:%s237_s14]   ;;  %v381_v17 = vld [vmem:[%s722_s0 + $0x5e] sm:$0x40]   ;;  %s271_s3 = smov 3  ;;  %s274_s4 = smov 12 }
  0x18   :  { %v240_v11 = vsel %vm10_vm1, %v376_v9, %v235_v8  ;;  %v379_v13 = vld [vmem:[%s722_s0 + $0x4] ss:$16 sm:%s253_s21]   ;;  %224 = vrot.lane.b32.xlu1 %v223_v7, %s418_s27  ;;  %s279_s9 = smov 48  ;;  %s419_s10 = smov 35   ;;  %v385_v24 = vld [vmem:[%s722_s0 + $0x5d] sm:$0x40]  }
  0x19   :  { %v244_v14 = vsel %vm14_vm2, %v377_v10, %v240_v11  ;;  %v256_v15 = vsel %vm6_vm0, %v379_v13, %v378_v12  ;;  %v380_v16 = vld [vmem:[%s722_s0 + $0x4] ss:$16 sm:%s258_s26]   ;;  %v382_v19 = vld [vmem:[%s722_s0 + $0x3] ss:$16 sm:%s271_s3]   ;;  %s292_s15 = smov 3  ;;  %s295_s16 = smov 12 }
  0x1a   :  { %v261_v18 = vsel %vm10_vm1, %v380_v16, %v256_v15  ;;  %v383_v20 = vld [vmem:[%s722_s0 + $0x3] ss:$16 sm:%s274_s4]   ;;  %v386_v26 = vld [vmem:[%s722_s0 + $0x2] ss:$16 sm:%s292_s15]   ;;  %s300_s21 = smov 48  ;;  %s420_s22 = smov 28  }
  0x1b   :  { %245 = vrot.lane.b32.xlu0 %v244_v14, %s419_s10  ;;  %v265_v21 = vsel %vm14_vm2, %v381_v17, %v261_v18  ;;  %v277_v22 = vsel %vm6_vm0, %v383_v20, %v382_v19  ;;  %v384_v23 = vld [vmem:[%s722_s0 + $0x3] ss:$16 sm:%s279_s9]   ;;  %v389_v31 = vld [vmem:[%s722_s0 + $0x5c] sm:$0x40]   ;;  %s313_s27 = smov 3  ;;  %s316_s28 = smov 12 }
  0x1c   :  { %v282_v25 = vsel %vm10_vm1, %v384_v23, %v277_v22  ;;  %v387_v27 = vld [vmem:[%s722_s0 + $0x2] ss:$16 sm:%s295_s16]   ;;  %266 = vrot.lane.b32.xlu1 %v265_v21, %s420_s22  ;;  %s321_s4 = smov 48  ;;  %s421_s5 = smov 21   ;;  %v393_v38 = vld [vmem:[%s722_s0 + $0x5b] sm:$0x40]  }
  0x1d   :  { %v286_v28 = vsel %vm14_vm2, %v385_v24, %v282_v25  ;;  %v298_v29 = vsel %vm6_vm0, %v387_v27, %v386_v26  ;;  %v388_v30 = vld [vmem:[%s722_s0 + $0x2] ss:$16 sm:%s300_s21]   ;;  %v390_v33 = vld [vmem:[%s722_s0 + $0x1] ss:$16 sm:%s313_s27]   ;;  %s2_s10 = smov 3  ;;  %s4_s11 = smov 12 }
  0x1e   :  { %v303_v32 = vsel %vm10_vm1, %v388_v30, %v298_v29  ;;  %v391_v34 = vld [vmem:[%s722_s0 + $0x1] ss:$16 sm:%s316_s28]   ;;  %s8_s12 = smov 48  ;;  %v3_v40 = vld [vmem:[%s722_s0] ss:$16 sm:%s2_s10]   ;;  %s422_s17 = smov 14  }
  0x1f   :  { %287 = vrot.lane.b32.xlu0 %v286_v28, %s421_s5  ;;  %v307_v35 = vsel %vm14_vm2, %v389_v31, %v303_v32  ;;  %v319_v36 = vsel %vm6_vm0, %v391_v34, %v390_v33  ;;  %v392_v37 = vld [vmem:[%s722_s0 + $0x1] ss:$16 sm:%s321_s4]   ;;  %v333_v45 = vld [vmem:[%s722_s0 + $0x5a] sm:$0x40]   ;;  %vm37_vm4 = vcmask 917320   ;;  %vm58_vm5 = vcmask 859920  }
  0x20   :  { %v324_v39 = vsel %vm10_vm1, %v392_v37, %v319_v36  ;;  %v5_v41 = vld [vmem:[%s722_s0] ss:$16 sm:%s4_s11]   ;;  %308 = vrot.lane.b32.xlu1 %v307_v35, %s422_s17  ;;  %vm79_vm6 = vcmask 802520   ;;  %vm100_vm7 = vcmask 745120   ;;  %vm121_vm8 = vcmask 687720  }
  0x21   :  { %v328_v42 = vsel %vm14_vm2, %v393_v38, %v324_v39  ;;  %v7_v43 = vsel %vm6_vm0, %v5_v41, %v3_v40  ;;  %v9_v44 = vld [vmem:[%s722_s0] ss:$16 sm:%s8_s12]   ;;  %s423_s0 = smov 7   ;;  %vm142_vm9 = vcmask 630320   ;;  %vm163_vm10 = vcmask 572920  }
  0x22   :  { %v11_v46 = vsel %vm10_vm1, %v9_v44, %v7_v43  ;;  %vm184_vm11 = vcmask 515520   ;;  %vm205_vm12 = vcmask 458120   ;;  %vm226_vm13 = vcmask 400720  }
  0x23   :  { %329 = vrot.lane.b32.xlu0 %v328_v42, %s423_s0  ;;  %v15_v47 = vsel %vm14_vm2, %v333_v45, %v11_v46  ;;  %vm247_vm14 = vcmask 343320   ;;  %vm268_vm15 = vcmask 285920   ;;  %vm289_vm0 = vcmask 228520  }
  0x24   :  { %17 = vst.msk [vmem:[%s723_s1] sm:$0x7f] %vm16_vm3, %v15_v47   ;;  %vm310_vm1 = vcmask 171120   ;;  %vm331_vm2 = vcmask 113720  }
  0x78   :  { %v36_v48 = vpop.permute.xlu0 %35  }
  0x79   :  { %38 = vst.msk [vmem:[%s723_s1] sm:$0x7f] %vm37_vm4, %v36_v48   ;;  %v78_v49 = vpop.permute.xlu1 %77  }
  0x7d   :  { %v57_v50 = vpop.permute.xlu0 %56  }
  0x7e   :  { %59 = vst.msk [vmem:[%s723_s1] sm:$0x7f] %vm58_vm5, %v57_v50   ;;  %v99_v51 = vpop.permute.xlu1 %98  }
  0x7f   :  { %80 = vst.msk [vmem:[%s723_s1] sm:$0x7f] %vm79_vm6, %v78_v49  }
  0x80   :  { %101 = vst.msk [vmem:[%s723_s1] sm:$0x7f] %vm100_vm7, %v99_v51  }
  0x81   :  { %v120_v52 = vpop.permute.xlu0 %119  }
  0x82   :  { %122 = vst.msk [vmem:[%s723_s1] sm:$0x7f] %vm121_vm8, %v120_v52   ;;  %v141_v53 = vpop.permute.xlu1 %140  }
  0x83   :  { %143 = vst.msk [vmem:[%s723_s1] sm:$0x7f] %vm142_vm9, %v141_v53  }
  0x85   :  { %v162_v54 = vpop.permute.xlu0 %161  }
  0x86   :  { %164 = vst.msk [vmem:[%s723_s1] sm:$0x7f] %vm163_vm10, %v162_v54   ;;  %v183_v55 = vpop.permute.xlu1 %182  }
  0x87   :  { %185 = vst.msk [vmem:[%s723_s1] sm:$0x7f] %vm184_vm11, %v183_v55  }
  0x89   :  { %v204_v56 = vpop.permute.xlu0 %203  }
  0x8a   :  { %206 = vst.msk [vmem:[%s723_s1] sm:$0x7f] %vm205_vm12, %v204_v56   ;;  %v225_v57 = vpop.permute.xlu1 %224  }
  0x8b   :  { %227 = vst.msk [vmem:[%s723_s1] sm:$0x7f] %vm226_vm13, %v225_v57  }
  0x8d   :  { %v246_v58 = vpop.permute.xlu0 %245  }
  0x8e   :  { %248 = vst.msk [vmem:[%s723_s1] sm:$0x7f] %vm247_vm14, %v246_v58   ;;  %v267_v59 = vpop.permute.xlu1 %266  }
  0x8f   :  { %269 = vst.msk [vmem:[%s723_s1] sm:$0x7f] %vm268_vm15, %v267_v59  }
  0x91   :  { %v288_v60 = vpop.permute.xlu0 %287  }
  0x92   :  { %290 = vst.msk [vmem:[%s723_s1] sm:$0x7f] %vm289_vm0, %v288_v60   ;;  %v309_v61 = vpop.permute.xlu1 %308  }
  0x93   :  { %311 = vst.msk [vmem:[%s723_s1] sm:$0x7f] %vm310_vm1, %v309_v61  }
  0x95   :  { %v330_v62 = vpop.permute.xlu0 %329  }
  0x96   :  { %332 = vst.msk [vmem:[%s723_s1] sm:$0x7f] %vm331_vm2, %v330_v62  }

// kernel: protonet_forward.1
= control target key start
LH: loop header
LB: loop body
LE: loop exit
PB: predicated region body
PF: predicated region fallthrough
CT: control target
= control target key end

     0   :  { %21 = vsyncpa [#allocation3], 0  ;;  %v898_v11 = vmov 0.0   ;;  %vm899_vm0 = vmmov 0   ;;  %s1407_s0 = inlined_call_operand.vmem [shape: f32[7,8,512], index: 0, kind: input, shape index: {}]   ;;  %s1408_s1 = inlined_call_operand.vmem [shape: f32[7,8,512], index: 1, kind: input, shape index: {}]   ;;  %s1409_s2 = inlined_call_operand.vmem [shape: f32[7,8,512], index: 2, kind: input, shape index: {}]   ;;  %s1410_s3 = inlined_call_operand.vmem [shape: f32[7,8,128], index: 3, kind: input, shape index: {}]   ;;  %s1411_s4 = inlined_call_operand.vmem [shape: f32[7,8,128], index: 4, kind: input, shape index: {}]   ;;  %s1412_s5 = inlined_call_operand.vmem [shape: f32[7,8,128], index: 5, kind: input, shape index: {}]   ;;  %s1413_s6 = inlined_call_operand.vmem [shape: f32[8,384], index: 6, kind: input, shape index: {}]   ;;  %s1414_s7 = inlined_call_operand.vmem [shape: f32[8,384], index: 7, kind: input, shape index: {}]   ;;  %s1415_s8 = inlined_call_operand.vmem [shape: f32[8,512], index: 8, kind: input, shape index: {}]   ;;  %s1416_s9 = inlined_call_operand.vmem [shape: f32[8,128], index: 9, kind: input, shape index: {}]   ;;  %s1417_s10 = inlined_call_operand.vmem [shape: f32[1,8], index: 10, kind: input, shape index: {}]   ;;  %s1418_s11 = inlined_call_operand.vmem [shape: f32[2,8], index: 11, kind: input, shape index: {}]   ;;  %s1419_s12 = inlined_call_operand.vmem [shape: f32[8,2], index: 12, kind: output, shape index: {0}]   ;;  %s1420_s13 = inlined_call_operand.hbm [shape: f32[8,8], index: 13, kind: output, shape index: {1}]   ;;  %s1421_s14 = inlined_call_operand.hbm [shape: f32[8,512], index: 14, kind: output, shape index: {2}]   ;;  %s1422_s15 = inlined_call_operand.hbm [shape: f32[8,128], index: 15, kind: output, shape index: {3}]  }
   0x1   :  { %v322_v0 = vld [vmem:[%s1414_s7 + $0x8] sm:$0xff]  ;;  %v321_v1 = vld [vmem:[%s1414_s7] sm:$0xff]  ;;  %v323_v5 = vld [vmem:[%s1414_s7 + $0x10] sm:$0xff] }
   0x2   :  { %v298_v2 = vld [vmem:[%s1413_s6 + $0x8] sm:$0xff]  ;;  %468 = vmatprep.subr.mxu0 %v322_v0  ;;  %v297_v4 = vld [vmem:[%s1413_s6] sm:$0xff]  ;;  %v1007_v9 = vld [vmem:[%s1413_s6 + $0x10] sm:$0xff] }
   0x3   :  { %v301_v3 = vmul.f32 %v298_v2, %v298_v2  ;;  %532 = vmatprep.mubr.f32.mxu0 %v298_v2  ;;  %v325_v6 = vld [vmem:[%s1415_s8 + $0x8] sm:$0xff]  ;;  %469 = vmatpush1.xpose.msra.mxu0 %v321_v1  ;;  %v300_v7 = vmul.f32 %v297_v4, %v297_v4  ;;  %v324_v8 = vld [vmem:[%s1415_s8] sm:$0xff]  ;;  %v302_v15 = vmul.f32 %v1007_v9, %v1007_v9  ;;  %v327_v47 = vld [vmem:[%s1415_s8 + $0x18] sm:$0xff] }
   0x4   :  { %328 = vmatprep.subr.mxu1 %v325_v6  ;;  %v48_v10 = vld [vmem:[%s1407_s0 + $0x8] sm:$0xff]  ;;  %794 = vmatprep.subr.mxu0 %v898_v11  ;;  %v47_v52 = vld [vmem:[%s1407_s0] sm:$0xff] }
   0x5   :  { %329 = vmatpush1.xpose.msra.mxu1 %v324_v8  ;;  %v52_v12 = vld [vmem:[%s1407_s0 + $0x28] sm:$0xff]  ;;  %v303_v19 = vadd.f32 %v301_v3, %v300_v7  ;;  %v51_v53 = vld [vmem:[%s1407_s0 + $0x20] sm:$0xff] }
   0x6   :  { %v56_v13 = vld [vmem:[%s1407_s0 + $0x48] sm:$0xff]  ;;  %533 = vmatmul.mubr.f32.vlgmr.msra.gmra.mrb[0].mxu0 %v297_v4  ;;  %398 = vmatprep.subr.mxu1 %v327_v47  ;;  %v55_v54 = vld [vmem:[%s1407_s0 + $0x40] sm:$0xff] }
   0x7   :  { %v60_v14 = vld [vmem:[%s1407_s0 + $0x68] sm:$0xff]  ;;  %795 = vmatpush3.xpose.msra.mxu0 %v323_v5  ;;  %796 = vmatprep.mubr.msk.f32.mxu0 %vm899_vm0, %v898_v11  ;;  %v304_v35 = vadd.f32 %v303_v19, %v302_v15  ;;  %v59_v58 = vld [vmem:[%s1407_s0 + $0x60] sm:$0xff] }
   0x8   :  { %v64_v16 = vld [vmem:[%s1407_s0 + $0x88] sm:$0xff]  ;;  %799 = vmatprep.subr.mxu0 %v898_v11  ;;  %v63_v59 = vld [vmem:[%s1407_s0 + $0x80] sm:$0xff] }
   0x9   :  { %v68_v17 = vld [vmem:[%s1407_s0 + $0xa8] sm:$0xff]  ;;  %305 = vadd.xlane.f32.xlu0 %v304_v35  ;;  %v67_v60 = vld [vmem:[%s1407_s0 + $0xa0] sm:$0xff] }
   0xa   :  { %v72_v18 = vld [vmem:[%s1407_s0 + $0xc8] sm:$0xff]  ;;  %v71_v0 = vld [vmem:[%s1407_s0 + $0xc0] sm:$0xff] }
   0xb   :  { %v76_v20 = vld [vmem:[%s1408_s1 + $0x8] sm:$0xff]  ;;  %v75_v1 = vld [vmem:[%s1408_s1] sm:$0xff] }
   0xc   :  { %v80_v21 = vld [vmem:[%s1408_s1 + $0x28] sm:$0xff]  ;;  %v132_v26 = vsub.f32 %v48_v10, %v76_v20  ;;  %v79_v2 = vld [vmem:[%s1408_s1 + $0x20] sm:$0xff]  ;;  %v131_v7 = vsub.f32 %v47_v52, %v75_v1 }
   0xd   :  { %v84_v22 = vld [vmem:[%s1408_s1 + $0x48] sm:$0xff]  ;;  %v136_v27 = vsub.f32 %v52_v12, %v80_v21  ;;  %v83_v4 = vld [vmem:[%s1408_s1 + $0x40] sm:$0xff]  ;;  %v135_v8 = vsub.f32 %v51_v53, %v79_v2 }
   0xe   :  { %v88_v23 = vld [vmem:[%s1408_s1 + $0x68] sm:$0xff]  ;;  %v140_v28 = vsub.f32 %v56_v13, %v84_v22  ;;  %797 = vmatmul.mubr.f32.vlgmr.msra.gmra.mrb[0].mxu0 %v1007_v9  ;;  %v87_v5 = vld [vmem:[%s1408_s1 + $0x60] sm:$0xff] }
   0xf   :  { %v92_v24 = vld [vmem:[%s1408_s1 + $0x88] sm:$0xff]  ;;  %v144_v32 = vsub.f32 %v60_v14, %v88_v23  ;;  %v91_v6 = vld [vmem:[%s1408_s1 + $0x80] sm:$0xff]  ;;  %v139_v14 = vsub.f32 %v55_v54, %v83_v4  ;;  %v143_v15 = vsub.f32 %v59_v58, %v87_v5  ;;  %801 = vmatprep.mubr.msk.f32.mxu0 %vm899_vm0, %v898_v11  ;;  %v256_v54 = vld [vmem:[%s1411_s4 + $0x10] sm:$0xff] }
  0x10   :  { %v96_v25 = vld [vmem:[%s1408_s1 + $0xa8] sm:$0xff]  ;;  %v148_v33 = vsub.f32 %v64_v16, %v92_v24  ;;  %v95_v9 = vld [vmem:[%s1408_s1 + $0xa0] sm:$0xff]  ;;  %v147_v16 = vsub.f32 %v63_v59, %v91_v6 }
  0x11   :  { %v100_v29 = vld [vmem:[%s1408_s1 + $0xc8] sm:$0xff]  ;;  %v152_v34 = vsub.f32 %v68_v17, %v96_v25  ;;  %v99_v12 = vld [vmem:[%s1408_s1 + $0xc0] sm:$0xff] }
  0x12   :  { %v104_v30 = vld [vmem:[%s1409_s2 + $0x8] sm:$0xff]  ;;  %v156_v39 = vsub.f32 %v72_v18, %v100_v29  ;;  %v103_v13 = vld [vmem:[%s1409_s2] sm:$0xff] }
  0x13   :  { %v108_v31 = vld [vmem:[%s1409_s2 + $0x28] sm:$0xff]  ;;  %v160_v40 = vmul.f32 %v132_v26, %v104_v30  ;;  %v107_v18 = vld [vmem:[%s1409_s2 + $0x20] sm:$0xff] }
  0x14   :  { %v112_v36 = vld [vmem:[%s1409_s2 + $0x48] sm:$0xff]  ;;  %v164_v41 = vmul.f32 %v136_v27, %v108_v31  ;;  %v111_v19 = vld [vmem:[%s1409_s2 + $0x40] sm:$0xff]  ;;  %v163_v27 = vmul.f32 %v135_v8, %v107_v18  ;;  %v50_v18 = vld [vmem:[%s1407_s0 + $0x18] sm:$0xff] }
  0x15   :  { %v116_v37 = vld [vmem:[%s1409_s2 + $0x68] sm:$0xff]  ;;  %v168_v44 = vmul.f32 %v140_v28, %v112_v36  ;;  %v188_v50 = vadd.f32 %v160_v40, %v76_v20  ;;  %v115_v20 = vld [vmem:[%s1409_s2 + $0x60] sm:$0xff]  ;;  %v167_v28 = vmul.f32 %v139_v14, %v111_v19  ;;  %v267_v14 = vld [vmem:[%s1412_s5 + $0x30] sm:$0xff] }
  0x16   :  { %v120_v38 = vld [vmem:[%s1409_s2 + $0x88] sm:$0xff]  ;;  %v172_v45 = vmul.f32 %v144_v32, %v116_v37  ;;  %v192_v51 = vadd.f32 %v164_v41, %v80_v21  ;;  %v151_v21 = vsub.f32 %v67_v60, %v95_v9  ;;  %v119_v11 = vld [vmem:[%s1409_s2 + $0x80] sm:$0xff]  ;;  %v191_v37 = vadd.f32 %v163_v27, %v79_v2  ;;  %v249_v41 = vld [vmem:[%s1410_s3 + $0x10] sm:$0xff] }
  0x17   :  { %v124_v42 = vld [vmem:[%s1409_s2 + $0xa8] sm:$0xff]  ;;  %v176_v46 = vmul.f32 %v148_v33, %v120_v38  ;;  %v196_v55 = vadd.f32 %v168_v44, %v84_v22  ;;  %v155_v22 = vsub.f32 %v71_v0, %v99_v12  ;;  %v127_v26 = vld [vmem:[%s1409_s2 + $0xc0] sm:$0xff]  ;;  %v175_v30 = vmul.f32 %v147_v16, %v119_v11  ;;  %v58_v11 = vld [vmem:[%s1407_s0 + $0x58] sm:$0xff] }
  0x18   :  { %v128_v43 = vld [vmem:[%s1409_s2 + $0xc8] sm:$0xff]  ;;  %v180_v48 = vmul.f32 %v152_v34, %v124_v42  ;;  %v200_v56 = vadd.f32 %v172_v45, %v88_v23  ;;  %v216_v63 = vadd.f32 %v192_v51, %v188_v50  ;;  %v159_v23 = vmul.f32 %v131_v7, %v103_v13  ;;  %v608_v34 = vld [vmem:[%s1416_s9] sm:$0xff]  ;;  %v250_v42 = vld [vmem:[%s1410_s3 + $0x18] sm:$0xff] }
  0x19   :  { %v184_v49 = vmul.f32 %v156_v39, %v128_v43  ;;  %v204_v57 = vadd.f32 %v176_v46, %v92_v24  ;;  %v183_v32 = vmul.f32 %v155_v22, %v127_v26  ;;  %v247_v35 = vld [vmem:[%s1410_s3] sm:$0xff]  ;;  %v195_v38 = vadd.f32 %v167_v28, %v83_v4  ;;  %800 = vmatpush3.xpose.msra.mxu0 %v608_v34  ;;  %v248_v40 = vld [vmem:[%s1410_s3 + $0x8] sm:$0xff]  ;;  %v264_v7 = vld [vmem:[%s1412_s5 + $0x18] sm:$0xff] }
  0x1a   :  { %v208_v61 = vadd.f32 %v180_v48, %v96_v25  ;;  %v220_v3 = vadd.f32 %v200_v56, %v196_v55  ;;  %v123_v25 = vld [vmem:[%s1409_s2 + $0xa0] sm:$0xff]  ;;  %v187_v33 = vadd.f32 %v159_v23, %v75_v1  ;;  %v203_v43 = vadd.f32 %v175_v30, %v91_v6  ;;  %v252_v47 = vld [vmem:[%s1410_s3 + $0x28] sm:$0xff]  ;;  %v253_v48 = vld [vmem:[%s1410_s3 + $0x30] sm:$0xff] }
  0x1b   :  { %v212_v62 = vadd.f32 %v184_v49, %v100_v29  ;;  %v171_v29 = vmul.f32 %v143_v15, %v115_v20  ;;  %v179_v31 = vmul.f32 %v151_v21, %v123_v25  ;;  %v211_v45 = vadd.f32 %v183_v32, %v99_v12  ;;  %v251_v46 = vld [vmem:[%s1410_s3 + $0x20] sm:$0xff]  ;;  %v255_v53 = vld [vmem:[%s1411_s4 + $0x8] sm:$0xff]  ;;  %v257_v56 = vld [vmem:[%s1411_s4 + $0x18] sm:$0xff] }
  0x1c   :  { %v228_v10 = vadd.f32 %v208_v61, %v204_v57  ;;  %v224_v17 = vadd.f32 %v220_v3, %v216_v63  ;;  %v215_v50 = vadd.f32 %v191_v37, %v187_v33  ;;  %v254_v52 = vld [vmem:[%s1411_s4] sm:$0xff]  ;;  %v259_v58 = vld [vmem:[%s1411_s4 + $0x28] sm:$0xff]  ;;  %v269_v60 = vsub.f32 %v248_v40, %v255_v53  ;;  %v260_v63 = vld [vmem:[%s1411_s4 + $0x30] sm:$0xff] }
  0x1d   :  { %v199_v39 = vadd.f32 %v171_v29, %v87_v5  ;;  %v207_v44 = vadd.f32 %v179_v31, %v95_v9  ;;  %v258_v57 = vld [vmem:[%s1411_s4 + $0x20] sm:$0xff]  ;;  %v268_v59 = vsub.f32 %v247_v35, %v254_v52  ;;  %v270_v61 = vsub.f32 %v249_v41, %v256_v54  ;;  %v262_v1 = vld [vmem:[%s1412_s5 + $0x8] sm:$0xff]  ;;  %v263_v6 = vld [vmem:[%s1412_s5 + $0x10] sm:$0xff] }
  0x1e   :  { %v232_v24 = vadd.f32 %v228_v10, %v212_v62  ;;  %v261_v0 = vld [vmem:[%s1412_s5] sm:$0xff]  ;;  %v271_v2 = vsub.f32 %v250_v42, %v257_v56  ;;  %v272_v3 = vsub.f32 %v251_v46, %v258_v57  ;;  %v273_v4 = vsub.f32 %v252_v47, %v259_v58  ;;  %v266_v13 = vld [vmem:[%s1412_s5 + $0x28] sm:$0xff]  ;;  %v326_v20 = vld [vmem:[%s1415_s8 + $0x10] sm:$0xff] }
  0x1f   :  { %v219_v51 = vadd.f32 %v199_v39, %v195_v38  ;;  %v227_v55 = vadd.f32 %v207_v44, %v203_v43  ;;  %v265_v8 = vld [vmem:[%s1412_s5 + $0x20] sm:$0xff]  ;;  %v274_v10 = vsub.f32 %v253_v48, %v260_v63  ;;  %v275_v9 = vmul.f32 %v268_v59, %v261_v0  ;;  %v62_v25 = vld [vmem:[%s1407_s0 + $0x78] sm:$0xff] }
  0x20   :  { %v236_v36 = vadd.f32 %v232_v24, %v224_v17  ;;  %v276_v12 = vmul.f32 %v269_v60, %v262_v1  ;;  %v277_v15 = vmul.f32 %v270_v61, %v263_v6  ;;  %v278_v16 = vmul.f32 %v271_v2, %v264_v7  ;;  %v54_v24 = vld [vmem:[%s1407_s0 + $0x38] sm:$0xff] }
  0x21   :  { %v223_v62 = vadd.f32 %v219_v51, %v215_v50  ;;  %v231_v5 = vadd.f32 %v227_v55, %v211_v45  ;;  %v279_v17 = vmul.f32 %v272_v3, %v265_v8  ;;  %v280_v21 = vmul.f32 %v273_v4, %v266_v13  ;;  %v66_v30 = vld [vmem:[%s1407_s0 + $0x98] sm:$0xff]  ;;  %v49_v3 = vld [vmem:[%s1407_s0 + $0x10] sm:$0xff] }
  0x22   :  { %v1171_v49 = vmul.f32 0.14285715, %v236_v36  ;;  %v281_v22 = vmul.f32 %v274_v10, %v267_v14  ;;  %v282_v23 = vadd.f32 %v275_v9, %v254_v52  ;;  %v283_v26 = vadd.f32 %v276_v12, %v255_v53  ;;  %v70_v31 = vld [vmem:[%s1407_s0 + $0xb8] sm:$0xff]  ;;  %v53_v8 = vld [vmem:[%s1407_s0 + $0x30] sm:$0xff] }
  0x23   :  { %v235_v19 = vadd.f32 %v231_v5, %v223_v62  ;;  %v284_v27 = vadd.f32 %v277_v15, %v256_v54  ;;  %v285_v28 = vadd.f32 %v278_v16, %v257_v56  ;;  %v286_v29 = vadd.f32 %v279_v17, %v258_v57  ;;  %v74_v32 = vld [vmem:[%s1407_s0 + $0xd8] sm:$0xff]  ;;  %v57_v10 = vld [vmem:[%s1407_s0 + $0x50] sm:$0xff] }
  0x24   :  { %392 = vmatprep.mubr.f32.mxu1 %v1171_v49  ;;  %244 = vst [vmem:[#allocation4 + $0x8] sm:$0xff] %v1171_v49  ;;  %v287_v34 = vadd.f32 %v280_v21, %v259_v58  ;;  %v288_v35 = vadd.f32 %v281_v22, %v260_v63  ;;  %v78_v36 = vld [vmem:[%s1408_s1 + $0x18] sm:$0xff]  ;;  %v289_v39 = vadd.f32 %v283_v26, %v282_v23  ;;  %v61_v9 = vld [vmem:[%s1407_s0 + $0x70] sm:$0xff] }
  0x25   :  { %v1241_v33 = vmul.f32 0.14285715, %v235_v19  ;;  %v82_v37 = vld [vmem:[%s1408_s1 + $0x38] sm:$0xff]  ;;  %v290_v40 = vadd.f32 %v285_v28, %v284_v27  ;;  %v134_v44 = vsub.f32 %v50_v18, %v78_v36  ;;  %v65_v16 = vld [vmem:[%s1407_s0 + $0x90] sm:$0xff] }
  0x26   :  { %v86_v38 = vld [vmem:[%s1408_s1 + $0x58] sm:$0xff]  ;;  %v138_v45 = vsub.f32 %v54_v24, %v82_v37  ;;  %v292_v46 = vadd.f32 %v287_v34, %v286_v29  ;;  %v69_v17 = vld [vmem:[%s1407_s0 + $0xb0] sm:$0xff] }
  0x27   :  { %v90_v41 = vld [vmem:[%s1408_s1 + $0x78] sm:$0xff]  ;;  %393 = vmatmul.mubr.f32.vlgmr.msra.gmra.mrb[0].mxu1 %v1241_v33  ;;  %243 = vst [vmem:[#allocation4] sm:$0xff] %v1241_v33  ;;  %v142_v51 = vsub.f32 %v58_v11, %v86_v38  ;;  %v291_v54 = vadd.f32 %v290_v40, %v289_v39  ;;  %v73_v18 = vld [vmem:[%s1407_s0 + $0xd0] sm:$0xff] }
  0x28   :  { %v94_v42 = vld [vmem:[%s1408_s1 + $0x98] sm:$0xff]  ;;  %v146_v52 = vsub.f32 %v62_v25, %v90_v41  ;;  %399 = vmatpush1.xpose.msra.mxu1 %v326_v20  ;;  %v293_v61 = vadd.f32 %v292_v46, %v288_v35  ;;  %v77_v22 = vld [vmem:[%s1408_s1 + $0x10] sm:$0xff] }
  0x29   :  { %v98_v43 = vld [vmem:[%s1408_s1 + $0xb8] sm:$0xff]  ;;  %v150_v53 = vsub.f32 %v66_v30, %v94_v42  ;;  %v81_v23 = vld [vmem:[%s1408_s1 + $0x30] sm:$0xff]  ;;  %v133_v30 = vsub.f32 %v49_v3, %v77_v22 }
  0x2a   :  { %v102_v47 = vld [vmem:[%s1408_s1 + $0xd8] sm:$0xff]  ;;  %v154_v58 = vsub.f32 %v70_v31, %v98_v43  ;;  %v294_v12 = vadd.f32 %v293_v61, %v291_v54  ;;  %v85_v24 = vld [vmem:[%s1408_s1 + $0x50] sm:$0xff] }
  0x2b   :  { %v106_v48 = vld [vmem:[%s1409_s2 + $0x18] sm:$0xff]  ;;  %v158_v59 = vsub.f32 %v74_v32, %v102_v47  ;;  %v89_v27 = vld [vmem:[%s1408_s1 + $0x70] sm:$0xff] }
  0x2c   :  { %v110_v50 = vld [vmem:[%s1409_s2 + $0x38] sm:$0xff]  ;;  %v162_v60 = vmul.f32 %v134_v44, %v106_v48  ;;  %v295_v11 = vmul.f32 0.14285715, %v294_v12  ;;  %v93_v28 = vld [vmem:[%s1408_s1 + $0x90] sm:$0xff] }
  0x2d   :  { %v114_v55 = vld [vmem:[%s1409_s2 + $0x58] sm:$0xff]  ;;  %v166_v0 = vmul.f32 %v138_v45, %v110_v50  ;;  %v97_v29 = vld [vmem:[%s1408_s1 + $0xb0] sm:$0xff] }
  0x2e   :  { %v118_v56 = vld [vmem:[%s1409_s2 + $0x78] sm:$0xff]  ;;  %v170_v1 = vmul.f32 %v142_v51, %v114_v55  ;;  %v190_v7 = vadd.f32 %v162_v60, %v78_v36  ;;  %v101_v32 = vld [vmem:[%s1408_s1 + $0xd0] sm:$0xff]  ;;  %v137_v36 = vsub.f32 %v53_v8, %v81_v23  ;;  %802 = vmatmul.mubr.f32.vlgmr.msra.gmra.mrb[0].mxu0 %v295_v11  ;;  %296 = vst [vmem:[#allocation6] sm:$0xff] %v295_v11 }
  0x2f   :  { %v122_v57 = vld [vmem:[%s1409_s2 + $0x98] sm:$0xff]  ;;  %v174_v2 = vmul.f32 %v146_v52, %v118_v56  ;;  %v194_v13 = vadd.f32 %v166_v0, %v82_v37  ;;  %v105_v34 = vld [vmem:[%s1409_s2 + $0x10] sm:$0xff]  ;;  %v141_v37 = vsub.f32 %v57_v10, %v85_v24  ;;  %v153_v44 = vsub.f32 %v69_v17, %v97_v29 }
  0x30   :  { %v126_v62 = vld [vmem:[%s1409_s2 + $0xb8] sm:$0xff]  ;;  %v178_v4 = vmul.f32 %v150_v53, %v122_v57  ;;  %v198_v14 = vadd.f32 %v170_v1, %v86_v38  ;;  %v109_v35 = vld [vmem:[%s1409_s2 + $0x30] sm:$0xff]  ;;  %v145_v38 = vsub.f32 %v61_v9, %v89_v27  ;;  %v157_v45 = vsub.f32 %v73_v18, %v101_v32 }
  0x31   :  { %v130_v63 = vld [vmem:[%s1409_s2 + $0xd8] sm:$0xff]  ;;  %v182_v5 = vmul.f32 %v154_v58, %v126_v62  ;;  %v202_v15 = vadd.f32 %v174_v2, %v90_v41  ;;  %v218_v25 = vadd.f32 %v194_v13, %v190_v7  ;;  %v113_v40 = vld [vmem:[%s1409_s2 + $0x50] sm:$0xff]  ;;  %v161_v50 = vmul.f32 %v133_v30, %v105_v34 }
  0x32   :  { %v186_v6 = vmul.f32 %v158_v59, %v130_v63  ;;  %v206_v19 = vadd.f32 %v178_v4, %v94_v42  ;;  %v117_v41 = vld [vmem:[%s1409_s2 + $0x70] sm:$0xff]  ;;  %v165_v51 = vmul.f32 %v137_v36, %v109_v35  ;;  %v169_v52 = vmul.f32 %v141_v37, %v113_v40 }
  0x33   :  { %v210_v20 = vadd.f32 %v182_v5, %v98_v43  ;;  %v222_v26 = vadd.f32 %v202_v15, %v198_v14  ;;  %v121_v42 = vld [vmem:[%s1409_s2 + $0x90] sm:$0xff]  ;;  %v149_v43 = vsub.f32 %v65_v16, %v93_v28 }
  0x34   :  { %v214_v21 = vadd.f32 %v186_v6, %v102_v47  ;;  %v125_v47 = vld [vmem:[%s1409_s2 + $0xb0] sm:$0xff] }
  0x35   :  { %v230_v31 = vadd.f32 %v210_v20, %v206_v19  ;;  %v226_v39 = vadd.f32 %v222_v26, %v218_v25  ;;  %v129_v48 = vld [vmem:[%s1409_s2 + $0xd0] sm:$0xff] }
  0x37   :  { %v234_v46 = vadd.f32 %v230_v31, %v214_v21 }
  0x38   :  { %22 = vsyncpa [#allocation5], 0  ;;  %v173_v53 = vmul.f32 %v145_v38, %v117_v41  ;;  %v177_v54 = vmul.f32 %v149_v43, %v121_v42  ;;  %v181_v55 = vmul.f32 %v153_v44, %v125_v47  ;;  %v185_v56 = vmul.f32 %v157_v45, %v129_v48  ;;  %s900_s23 = smov [#allocation4]   ;;  %s901_s24 = smov [#allocation2]  }
  0x39   :  { %v238_v57 = vadd.f32 %v234_v46, %v226_v39  ;;  %v189_v58 = vadd.f32 %v161_v50, %v77_v22  ;;  %v193_v59 = vadd.f32 %v165_v51, %v81_v23  ;;  %v197_v60 = vadd.f32 %v169_v52, %v85_v24  ;;  %v711_v46 = vld [vmem:[%s1418_s11] sm:$0x3]  ;;  %s762_s0 = sshll.u32 %s900_s23, 4  ;;  %s752_s3 = sshll.u32 %s901_s24, 4  ;;  %s763_s0 = int_to_ptr.vmem [resolvable:$true] %s762_s0  ;;  %s753_s3 = int_to_ptr.vmem [resolvable:$true] %s752_s3 }
  0x3a   :  { %v201_v61 = vadd.f32 %v173_v53, %v89_v27  ;;  %v205_v62 = vadd.f32 %v177_v54, %v93_v28  ;;  %v209_v63 = vadd.f32 %v181_v55, %v97_v29  ;;  %v213_v0 = vadd.f32 %v185_v56, %v101_v32  ;;  %s828_s11 = scalar_lea.vmem %s763_s0, 512  ;;  %p833_p1 = scmp.lt.s32.totalorder %s763_s0, %s763_s0 }
  0x3b   :  { %v242_v1 = vmul.f32 0.14285715, %v238_v57  ;;  %v217_v2 = vadd.f32 %v193_v59, %v189_v58  ;;  %v317_v3 = vmul.f32 %v295_v11, %v295_v11  ;;  %v307_v8 = vmul.f32 %v1241_v33, %v1241_v33  ;;  %p829_p0 = scmp.ne.s32.totalorder %s763_s0, %s828_s11  ;;  %p834_p2 = scmp.lt.s32.totalorder %s828_s11, %s828_s11 }
  0x3c   :  { %v221_v4 = vadd.f32 %v201_v61, %v197_v60  ;;  %v229_v5 = vadd.f32 %v209_v63, %v205_v62  ;;  %v308_v10 = vmul.f32 %v1171_v49, %v1171_v49  ;;  %v789_v49 = vld [vmem:[%s1417_s10] ss:$0 sm:$0xff]  ;;  %vm700_vm3 = vcmask 64512  }
  0x3d   :  { %462 = vmatprep.mubr.f32.mxu1 %v242_v1  ;;  %246 = vst [vmem:[#allocation4 + $0x18] sm:$0xff] %v242_v1  ;;  %318 = vadd.xlane.f32.xlu1 %v317_v3  ;;  %v310_v15 = vmul.f32 %v242_v1, %v242_v1  ;;  %v712_v41 = vlaneseq  ;;  %p835_p3 = por %p834_p2, %p833_p1 }
  0x3e   :  { %v225_v6 = vadd.f32 %v221_v4, %v217_v2  ;;  %v233_v7 = vadd.f32 %v229_v5, %v213_v0  ;;  %v311_v13 = vadd.f32 %v308_v10, %v307_v8 }
  0x3f   :  { %v713_v43 = vshrl.u32 %v712_v41, 7  ;;  %p836_p4 = pnand %p835_p3, %p829_p0 }
  0x40   :  { %v237_v9 = vadd.f32 %v233_v7, %v225_v6 }
  0x41   :  { %v722_v44 = vsub.s32 1, %v713_v43  ;;  %v714_v45 = vsub.s32 0, %v713_v43 }
  0x42   :  { %v241_v12 = vmul.f32 0.14285715, %v237_v9 }
  0x43   :  { %v723_v47 = vrot.slane %v711_v46, %v722_v44  ;;  %v715_v48 = vrot.slane %v711_v46, %v714_v45 }
  0x44   :  { %463 = vmatmul.mubr.f32.vlgmr.msra.gmra.mrb[0].mxu1 %v241_v12  ;;  %245 = vst [vmem:[#allocation4 + $0x10] sm:$0xff] %v241_v12  ;;  %v309_v14 = vmul.f32 %v241_v12, %v241_v12 }
  0x46   :  { %v312_v16 = vadd.f32 %v311_v13, %v309_v14 }
  0x48   :  { %v313_v17 = vadd.f32 %v312_v16, %v310_v15 }
  0x4a   :  { %314 = vadd.xlane.f32.xlu0 %v313_v17 }
  0x96   :  { %v306_v18 = vpop.xlane.xlu0 %305 }
  0xca   :  { %v319_v23 = vpop.xlane.xlu1 %318 }
  0xd7   :  { %v315_v21 = vpop.xlane.xlu0 %314 }
  0xd8   :  { %v316_v22 = vadd.f32 %v315_v21, %v306_v18 }
  0xda   :  { %v320_v33 = vadd.f32 %v319_v23, %v316_v22 }
  0xdc   :  { %v687_v26 = vadd.f32 %v789_v49, %v320_v33 }
 0x101   :  { %v675_v19 = vpop.f32.mrb[0].mxu0 }
 0x102   :  { %v803_v20 = vpop.f32.mrb[1].mxu0 }
 0x117   :  { %v464_v24 = vpop.f32.mrb[0].mxu1 }
 0x118   :  { %v804_v11 = vadd.f32 %v675_v19, %v464_v24  ;;  %v466_v25 = vpop.f32.mrb[1].mxu1 }
 0x11a   :  { %v688_v27 = vmul.f32 2.0, %v804_v11 }
 0x11c   :  { %v689_v28 = vsub.f32 %v687_v26, %v688_v27 }
 0x11e   :  { %v690_v29 = vmax.f32 %v689_v28, 0.0 }
 0x120   :  { %816 = vrsqrt.f32 %v690_v29  ;;  %vm693_vm1 = vcmp.eq.f32.partialorder %v690_v29, inf  ;;  %v696_v32 = vand.u32 2147483648, %v690_v29  ;;  %vm695_vm2 = vcmp.eq.f32.partialorder %v690_v29, 0.0 }
 0x12a   :  { %v817_v30 = vpop.eup %816 }
 0x12b   :  { %v692_v31 = vmul.f32 %v817_v30, %v690_v29 }
 0x12d   :  { %v694_v34 = vsel %vm693_vm1, %v690_v29, %v692_v31 }
 0x12e   :  { %v697_v35 = vsel %vm695_vm2, %v696_v32, %v694_v34 }
 0x12f   :  { %818 = vrcp.f32 %v697_v35 }
 0x139   :  { %v819_v36 = vpop.eup %818 }
 0x13a   :  { %v701_v37 = vsel %vm700_vm3, %v819_v36, inf }
 0x13b   :  { %702 = vmin.xlane.f32.xlu1 %v701_v37 }
 0x1c8   :  { %v703_v38 = vpop.xlane.xlu1 %702 }
 0x1c9   :  { %v704_v39 = vsub.f32 %v819_v36, %v703_v38 }
 0x1cb   :  { %v705_v40 = vsel %vm700_vm3, %v704_v39, -inf }
 0x1cc   :  { %706 = vmax.xlane.f32.xlu0 %v705_v40 }
 0x259   :  { %v707_v42 = vpop.xlane.xlu0 %706 }
 0x25a   :  { %820 = vrcp.f32 %v707_v42 }
 0x264   :  { %v821_v50 = vpop.eup %820 }
 0x265   :  { %v709_v51 = vmul.f32 %v821_v50, %v704_v39 }
 0x267   :  { %v724_v52 = vmul.f32 %v723_v47, %v709_v51  ;;  %710 = vst.msk [vmem:[#allocation2] sm:$0xff] %vm700_vm3, %v709_v51  ;;  %v716_v53 = vmul.f32 %v715_v48, %v709_v51 }
 0x269   :  { %v725_v54 = vsel %vm700_vm3, %v724_v52, 0.0  ;;  %v717_v55 = vsel %vm700_vm3, %v716_v53, 0.0 }
 0x26a   :  { %726 = vadd.xlane.f32.xlu0 %v725_v54  ;;  %718 = vadd.xlane.f32.xlu1 %v717_v55 }
 0x26b   :  { %839 = shalt.err (!%p836_p4)
}
 0x26c   :  { %s840_s26 = scalar_lea.hbm %s1421_s14, 512 }
 0x26d   :  { %p841_p5 = scmp.ne.s32.totalorder %s1421_s14, %s840_s26  ;;  %p844_p6 = scmp.lt.u32.totalorder %s840_s26, %s1421_s14 }
 0x26f   :  { %p846_p7 = pnand %p844_p6, %p841_p5 }
 0x271   :  { %849 = shalt.err (!%p846_p7)
}
 0x272   :  { %765 = dma.vmem_to_hbm [thread:$0]  %s763_s0, 512, %s1421_s14, [#allocation5]  }
 0x273   :  { %s850_s8 = scalar_lea.vmem %s753_s3, 128  ;;  %p855_p9 = scmp.lt.s32.totalorder %s753_s3, %s753_s3 }
 0x274   :  { %p851_p8 = scmp.ne.s32.totalorder %s753_s3, %s850_s8  ;;  %p856_p10 = scmp.lt.s32.totalorder %s850_s8, %s850_s8 }
 0x276   :  { %p857_p11 = por %p856_p10, %p855_p9 }
 0x278   :  { %p858_p12 = pnand %p857_p11, %p851_p8 }
 0x27a   :  { %861 = shalt.err (!%p858_p12)
}
 0x27b   :  { %s862_s17 = scalar_lea.hbm %s1420_s13, 128 }
 0x27c   :  { %p863_p13 = scmp.ne.s32.totalorder %s1420_s13, %s862_s17  ;;  %p866_p0 = scmp.lt.u32.totalorder %s862_s17, %s1420_s13 }
 0x27e   :  { %p868_p1 = pnand %p866_p0, %p863_p13 }
 0x280   :  { %871 = shalt.err (!%p868_p1)
}
 0x281   :  { %755 = dma.vmem_to_hbm [thread:$0]  %s753_s3, 128, %s1420_s13, [#allocation3]  }
 0x282   :  { %s902_s2 = smov [#allocation6]  }
 0x283   :  { %s772_s21 = sshll.u32 %s902_s2, 4  ;;  %s773_s21 = int_to_ptr.vmem [resolvable:$true] %s772_s21 }
 0x284   :  { %s872_s10 = scalar_lea.vmem %s773_s21, 128  ;;  %p877_p3 = scmp.lt.s32.totalorder %s773_s21, %s773_s21 }
 0x285   :  { %p873_p2 = scmp.ne.s32.totalorder %s773_s21, %s872_s10  ;;  %p878_p4 = scmp.lt.s32.totalorder %s872_s10, %s872_s10 }
 0x287   :  { %p879_p5 = por %p878_p4, %p877_p3 }
 0x289   :  { %p880_p6 = pnand %p879_p5, %p873_p2 }
 0x28b   :  { %883 = shalt.err (!%p880_p6)
}
 0x28c   :  { %s884_s0 = scalar_lea.hbm %s1422_s15, 128 }
 0x28d   :  { %p885_p7 = scmp.ne.s32.totalorder %s1422_s15, %s884_s0  ;;  %p888_p8 = scmp.lt.u32.totalorder %s884_s0, %s1422_s15 }
 0x28f   :  { %p890_p9 = pnand %p888_p8, %p885_p7 }
 0x291   :  { %893 = shalt.err (!%p890_p9)
}
 0x292   :  { %775 = dma.vmem_to_hbm [thread:$0]  %s773_s21, 128, %s1422_s15, [#allocation5]   ;;  %vm739_vm4 = vcmask 7168   ;;  %vm742_vm5 = vcmask 15368  }
 0x2f7   :  { %v727_v56 = vpop.xlane.xlu0 %726  ;;  %v719_v57 = vpop.xlane.xlu1 %718 }
 0x2f8   :  { %v728_v58 = vmax.f32 %v719_v57, %v727_v56 }
 0x2fa   :  { %v729_v59 = vsub.f32 %v719_v57, %v728_v58  ;;  %v732_v60 = vsub.f32 %v727_v56, %v728_v58 }
 0x2fc   :  { %v730_v61 = vmul.f32 1.442695, %v729_v59  ;;  %v733_v62 = vmul.f32 1.442695, %v732_v60 }
 0x2fe   :  { %822 = vpow2.f32 %v730_v61 }
 0x2ff   :  { %824 = vpow2.f32 %v733_v62 }
 0x308   :  { %v823_v63 = vpop.eup %822 }
 0x309   :  { %v825_v0 = vpop.eup %824 }
 0x30a   :  { %v735_v1 = vadd.f32 %v825_v0, %v823_v63 }
 0x30c   :  { %826 = vrcp.f32 %v735_v1 }
 0x316   :  { %v827_v2 = vpop.eup %826 }
 0x317   :  { %v738_v3 = vmul.f32 %v827_v2, %v823_v63  ;;  %v741_v4 = vmul.f32 %v827_v2, %v825_v0 }
 0x319   :  { %740 = vst.msk [vmem:[%s1419_s12] sm:$0xff] %vm739_vm4, %v738_v3 }
 0x31a   :  { %743 = vst.msk [vmem:[%s1419_s12] sm:$0xff] %vm742_vm5, %v741_v4 }
 0x31b   :  { %894 = dma.done.wait [#allocation3], 128  }
 0x31c   :  { %895 = vsyncadd [#allocation3], 4294967168 }
 0x31d   :  { %896 = dma.done.wait [#allocation5], 640  }
 0x31e   :  { %897 = vsyncadd [#allocation5], 4294966656 }
 0x31f   :  { %787 = vsyncpa [#allocation3], 1 }
 0x320   :  { %788 = vsyncpa [#allocation5], 1 }

</bundles_post_ra>
